<compile_context>
chip_gen: v7x
topology: tpu7x:2x2x1
jax: 0.10.0
libtpu: 0.0.40
codegen_flags: <defaults>
</compile_context>

<pallas_src>
import functools

import jax
import jax.numpy as jnp
from jax.experimental import pallas as pl
from jax.experimental.pallas import tpu as pltpu

# ---- config for the synthetic hyper_module (dynamic per-patch Conv2d) ----
KK = 3           # dynamic conv kernel size
PAD = KK // 2    # HyperPatch padding (reflect)
OUT_CH = 8       # dynamic conv output channels


# ----------------------------- small helpers -----------------------------
def _round_up(x, m):
    return (x + m - 1) // m * m


def _padded_tile_bytes(rows, cols, itemsize=4):
    # VMEM footprint of a (rows, cols) f32 tile after (8, 128) vreg padding.
    return _round_up(rows, 8) * _round_up(cols, 128) * itemsize


def _tpu_kind():
    try:
        return jax.devices()[0].device_kind.lower()
    except Exception:  # pragma: no cover - CPU / interpret fallbacks
        return ""


def _detect_num_tensorcores():
    # v5e / v6e expose one TensorCore per JAX device; v7x has two per chip.
    return 2 if "v7" in _tpu_kind() else 1


def _vmem_limit_bytes():
    # v7x has only 64 MiB physical VMEM per core -> keep headroom; v5e/v6e
    # have 128 MiB physical so 32 MiB scoped is comfortably safe.
    return (24 << 20) if "v7" in _tpu_kind() else (32 << 20)


def _pick_patch_block(n, oc, ck, s, num_cores=1, max_unroll=32,
                      vmem_budget=8 << 20):
    """Largest divisor NB of n such that:
       * the static unroll stays bounded (compile time / code size),
       * double-buffered blocks stay well inside a conservative VMEM budget,
       * on multi-TC parts (v7x) there is at least one block per core.
    On single-TC parts this naturally collapses to NB = n, grid = (1,)."""
    per_patch = 2 * (_padded_tile_bytes(oc, ck) + _padded_tile_bytes(ck, s))
    best = 1
    for d in range(1, n + 1):
        if n % d:
            continue
        if d > max_unroll:
            continue
        out_bytes = 2 * 2 * _padded_tile_bytes(oc, d * s)   # out + bias slabs
        if per_patch * d + out_bytes > vmem_budget:
            continue
        if num_cores > 1 and (n // d) < num_cores:
            continue
        best = max(best, d)
    return best


def _pick_store_chunk(nb, s, max_live=8):
    """Group patches so each deferred store is a lane-dense slab (ideally a
    multiple of 128 lanes -> unmasked vst) while bounding live accumulators."""
    chunk = 1
    for c in range(1, nb + 1):
        if nb % c:
            continue
        if c > max_live:
            break
        chunk = c
        if (c * s) % 128 == 0:
            break
    return chunk


# ------------------------- Pallas kernel (hot path) -------------------------
def _hyper_conv_kernel(w_ref, cols_ref, bias_ref, o_ref, *, nb, s, chunk):
    # w_ref:    (NB, OC, CK)    per-patch dynamic conv weights
    # cols_ref: (NB, CK, S)     per-patch im2col columns
    # bias_ref: (1, OC, NB*S)   pre-broadcast lane-dense bias slab
    # o_ref:    (1, OC, NB*S)   lane-dense output slab for this block of patches
    #
    # `chunk` patches at a time: all MXU pushes back-to-back, then ONE dense
    # (OC, chunk*S) store (chunk*S is a multiple of 128 lanes when possible).
    for c0 in range(0, nb, chunk):
        accs = [
            jnp.dot(w_ref[c0 + i], cols_ref[c0 + i],
                    preferred_element_type=jnp.float32)
            for i in range(chunk)
        ]
        slab = accs[0] if chunk == 1 else jnp.concatenate(accs, axis=-1)
        lo = c0 * s
        hi = lo + chunk * s
        o_ref[0, :, lo:hi] = (slab + bias_ref[0, :, lo:hi]).astype(o_ref.dtype)


def _dynamic_conv_pallas(w_dyn, cols, b_dyn, num_tensorcores=None):
    """out[n] = W_n @ C_n + b_n for every patch n, via pallas_call."""
    n, oc, ck = w_dyn.shape
    s = cols.shape[-1]
    cores = (_detect_num_tensorcores() if num_tensorcores is None
             else num_tensorcores)

    nb = _pick_patch_block(n, oc, ck, s, num_cores=cores)
    g = n // nb
    chunk = _pick_store_chunk(nb, s)

    # Tiny pre-broadcast bias slab, lane-dense and aligned with the output
    # layout: bias_slab[g, o, ni*S + si] = b[g*NB + ni, o].
    bias_slab = jnp.broadcast_to(
        jnp.transpose(b_dyn.reshape(g, nb, oc), (0, 2, 1))[..., None],
        (g, oc, nb, s)).reshape(g, oc, nb * s)

    if g > 1 and cores > 1:
        # Only CORE_PARALLEL actually shards grid steps across TensorCores
        # (plain "parallel" has near-zero codegen impact).  Engaged only when
        # a 2-TC part (v7x) is detected.
        sem = (pltpu.CORE_PARALLEL,)
    elif g > 1:
        sem = (pltpu.PARALLEL,)
    else:
        sem = (pltpu.ARBITRARY,)

    out_wide = pl.pallas_call(
        functools.partial(_hyper_conv_kernel, nb=nb, s=s, chunk=chunk),
        out_shape=jax.ShapeDtypeStruct((g, oc, nb * s), jnp.float32),
        grid=(g,),
        in_specs=[
            pl.BlockSpec((nb, oc, ck), lambda i: (i, 0, 0)),
            pl.BlockSpec((nb, ck, s), lambda i: (i, 0, 0)),
            pl.BlockSpec((1, oc, nb * s), lambda i: (i, 0, 0)),
        ],
        out_specs=pl.BlockSpec((1, oc, nb * s), lambda i: (i, 0, 0)),
        compiler_params=pltpu.CompilerParams(
            dimension_semantics=sem,
            vmem_limit_bytes=_vmem_limit_bytes(),
        ),
    )(w_dyn, cols, bias_slab)

    # (G, OC, NB*S) -> (N, OC, S): layout plumbing only (wrapper side).
    out = out_wide.reshape(g, oc, nb, s)
    out = jnp.transpose(out, (0, 2, 1, 3)).reshape(n, oc, s)
    return out


# ----------------------------- JAX glue (reshape/pad) -----------------------------
def _im2col_patches(x, fh, fw, kk, pad):
    """Reflect-pad + per-patch im2col from kk*kk globally shifted views of the
    padded image.  Returns (N, c*kk*kk, ph*pw) with contraction index ordered
    (c, ky, kx) to match W.reshape(OC, c*kk*kk)."""
    b, c, h, w = x.shape
    ph, pw = h // fh, w // fw
    x_pad = jnp.pad(x, ((0, 0), (0, 0), (pad, pad), (pad, pad)), mode="reflect")
    shifted = jnp.stack(
        [x_pad[:, :, dy:dy + h, dx:dx + w] for dy in range(kk) for dx in range(kk)],
        axis=2)                                              # (b, c, kk*kk, h, w)
    shifted = shifted.reshape(b, c, kk * kk, fh, ph, fw, pw)
    shifted = jnp.transpose(shifted, (0, 3, 5, 1, 2, 4, 6))   # (b, fh, fw, c, kk*kk, ph, pw)
    return shifted.reshape(b * fh * fw, c * kk * kk, ph * pw)


def _im2col_patches_reference(x, fh, fw, kk, pad):
    """Direct mirror of F.pad(reflect) + F.unfold((kh,kw), stride=(ph,pw)) +
    per-patch im2col; used only by the pure-JAX reference path."""
    b, c, h, w = x.shape
    ph, pw = h // fh, w // fw
    kh, kw = ph + 2 * pad, pw + 2 * pad
    x_pad = jnp.pad(x, ((0, 0), (0, 0), (pad, pad), (pad, pad)), mode="reflect")
    blocks = [x_pad[:, :, i * ph:i * ph + kh, j * pw:j * pw + kw]
              for i in range(fh) for j in range(fw)]
    patches = jnp.stack(blocks, axis=1).reshape(b * fh * fw, c, kh, kw)
    wins = [patches[:, :, dy:dy + ph, dx:dx + pw].reshape(b * fh * fw, c, ph * pw)
            for dy in range(kk) for dx in range(kk)]
    return jnp.stack(wins, axis=2).reshape(b * fh * fw, c * kk * kk, ph * pw)


def hyper_patch_forward(x, weight, out_ch=OUT_CH, kk=KK, pad=PAD,
                        use_pallas=True, num_tensorcores=None):
    """HyperPatch.forward with hyper_module = dynamic per-patch kk x kk Conv2d.

    x:      (b, c, h, w)    float32
    weight: (b, P, fh, fw)  float32, P = out_ch*c*kk*kk + out_ch (hyper_params)
    returns (b, out_ch, h, w)
    """
    b, c, h, w = x.shape
    P, fh, fw = weight.shape[1], weight.shape[2], weight.shape[3]
    ck = c * kk * kk
    assert P == out_ch * ck + out_ch
    ph, pw = h // fh, w // fw
    n = b * fh * fw

    # weight.permute(0, 2, 3, 1).reshape(-1, P)  -> per-patch weight vectors
    w_flat = jnp.transpose(weight, (0, 2, 3, 1)).reshape(n, P)
    w_dyn = w_flat[:, :out_ch * ck].reshape(n, out_ch, ck)
    b_dyn = w_flat[:, out_ch * ck:]                           # (N, OC)

    if use_pallas:
        cols = _im2col_patches(x, fh, fw, kk, pad)            # (N, CK, S)
        out = _dynamic_conv_pallas(w_dyn, cols, b_dyn, num_tensorcores)
    else:
        cols = _im2col_patches_reference(x, fh, fw, kk, pad)
        out = jnp.einsum("nok,nks->nos", w_dyn, cols) + b_dyn[:, :, None]

    # fold back to the full image (non-overlapping blocks)
    out = out.reshape(b, fh, fw, out_ch, ph, pw)
    out = jnp.transpose(out, (0, 3, 1, 4, 2, 5)).reshape(b, out_ch, h, w)
    return out


if __name__ == "__main__":
    key = jax.random.PRNGKey(0)
    b, c, h, w = 2, 4, 16, 16
    fh, fw = 4, 4
    P = OUT_CH * c * KK * KK + OUT_CH                         # = 296 hyper params

    k_x, k_w = jax.random.split(key)
    x = jax.random.normal(k_x, (b, c, h, w), dtype=jnp.float32)
    weight = 0.1 * jax.random.normal(k_w, (b, P, fh, fw), dtype=jnp.float32)

    fwd = jax.jit(functools.partial(hyper_patch_forward, use_pallas=True))
    out = jax.block_until_ready(fwd(x, weight))

    ref = hyper_patch_forward(x, weight, use_pallas=False)
    assert out.shape == (b, OUT_CH, h, w), out.shape
    assert jnp.allclose(out, ref, atol=1e-4, rtol=1e-4), float(
        jnp.max(jnp.abs(out - ref)))

    print("KERNEL_OK")
</pallas_src>

<mosaic_0001>
module attributes {stable_mosaic.version = 11 : i64} {
  func.func @_hyper_conv_kernel(%arg0: i32, %arg1: memref<32x8x36xf32, #tpu.memory_space<vmem>>, %arg2: memref<32x36x16xf32, #tpu.memory_space<vmem>>, %arg3: memref<1x8x512xf32, #tpu.memory_space<vmem>>, %arg4: memref<1x8x512xf32, #tpu.memory_space<vmem>>) attributes {dimension_semantics = [#tpu.dimension_semantics<arbitrary>], iteration_bounds = array<i64: 1>, scalar_prefetch = 0 : i64, scratch_operands = 0 : i64, tpu.core_type = #tpu.core_type<tc>, window_params = [{transform_indices = @transform_0, window_bounds = array<i64: 32, 8, 36>}, {transform_indices = @transform_1, window_bounds = array<i64: 32, 36, 16>}, {transform_indices = @transform_2, window_bounds = array<i64: 1, 8, 512>}, {transform_indices = @transform_3, window_bounds = array<i64: 1, 8, 512>}]} {
    %c0 = arith.constant 0 : index
    %c0_0 = arith.constant 0 : index
    %c0_1 = arith.constant 0 : index
    %0 = vector.load %arg1[%c0, %c0_0, %c0_1] : memref<32x8x36xf32, #tpu.memory_space<vmem>>, vector<1x8x36xf32>
    %1 = vector.shape_cast %0 : vector<1x8x36xf32> to vector<8x36xf32>
    %c0_2 = arith.constant 0 : index
    %c0_3 = arith.constant 0 : index
    %c0_4 = arith.constant 0 : index
    %2 = vector.load %arg2[%c0_2, %c0_3, %c0_4] : memref<32x36x16xf32, #tpu.memory_space<vmem>>, vector<1x36x16xf32>
    %3 = vector.shape_cast %2 : vector<1x36x16xf32> to vector<36x16xf32>
    %cst = arith.constant dense<0.000000e+00> : vector<8x16xf32>
    %4 = tpu.matmul %1, %3, %cst {dimension_numbers = #tpu.dot_dimension_numbers<[1], [0], [0], [1], [0, 0, 1, 1], [], []>} : vector<8x36xf32>, vector<36x16xf32>, vector<8x16xf32> -> vector<8x16xf32>
    %c1 = arith.constant 1 : index
    %c0_5 = arith.constant 0 : index
    %c0_6 = arith.constant 0 : index
    %5 = vector.load %arg1[%c1, %c0_5, %c0_6] : memref<32x8x36xf32, #tpu.memory_space<vmem>>, vector<1x8x36xf32>
    %6 = vector.shape_cast %5 : vector<1x8x36xf32> to vector<8x36xf32>
    %c1_7 = arith.constant 1 : index
    %c0_8 = arith.constant 0 : index
    %c0_9 = arith.constant 0 : index
    %7 = vector.load %arg2[%c1_7, %c0_8, %c0_9] : memref<32x36x16xf32, #tpu.memory_space<vmem>>, vector<1x36x16xf32>
    %8 = vector.shape_cast %7 : vector<1x36x16xf32> to vector<36x16xf32>
    %cst_10 = arith.constant dense<0.000000e+00> : vector<8x16xf32>
    %9 = tpu.matmul %6, %8, %cst_10 {dimension_numbers = #tpu.dot_dimension_numbers<[1], [0], [0], [1], [0, 0, 1, 1], [], []>} : vector<8x36xf32>, vector<36x16xf32>, vector<8x16xf32> -> vector<8x16xf32>
    %c2 = arith.constant 2 : index
    %c0_11 = arith.constant 0 : index
    %c0_12 = arith.constant 0 : index
    %10 = vector.load %arg1[%c2, %c0_11, %c0_12] : memref<32x8x36xf32, #tpu.memory_space<vmem>>, vector<1x8x36xf32>
    %11 = vector.shape_cast %10 : vector<1x8x36xf32> to vector<8x36xf32>
    %c2_13 = arith.constant 2 : index
    %c0_14 = arith.constant 0 : index
    %c0_15 = arith.constant 0 : index
    %12 = vector.load %arg2[%c2_13, %c0_14, %c0_15] : memref<32x36x16xf32, #tpu.memory_space<vmem>>, vector<1x36x16xf32>
    %13 = vector.shape_cast %12 : vector<1x36x16xf32> to vector<36x16xf32>
    %cst_16 = arith.constant dense<0.000000e+00> : vector<8x16xf32>
    %14 = tpu.matmul %11, %13, %cst_16 {dimension_numbers = #tpu.dot_dimension_numbers<[1], [0], [0], [1], [0, 0, 1, 1], [], []>} : vector<8x36xf32>, vector<36x16xf32>, vector<8x16xf32> -> vector<8x16xf32>
    %c3 = arith.constant 3 : index
    %c0_17 = arith.constant 0 : index
    %c0_18 = arith.constant 0 : index
    %15 = vector.load %arg1[%c3, %c0_17, %c0_18] : memref<32x8x36xf32, #tpu.memory_space<vmem>>, vector<1x8x36xf32>
    %16 = vector.shape_cast %15 : vector<1x8x36xf32> to vector<8x36xf32>
    %c3_19 = arith.constant 3 : index
    %c0_20 = arith.constant 0 : index
    %c0_21 = arith.constant 0 : index
    %17 = vector.load %arg2[%c3_19, %c0_20, %c0_21] : memref<32x36x16xf32, #tpu.memory_space<vmem>>, vector<1x36x16xf32>
    %18 = vector.shape_cast %17 : vector<1x36x16xf32> to vector<36x16xf32>
    %cst_22 = arith.constant dense<0.000000e+00> : vector<8x16xf32>
    %19 = tpu.matmul %16, %18, %cst_22 {dimension_numbers = #tpu.dot_dimension_numbers<[1], [0], [0], [1], [0, 0, 1, 1], [], []>} : vector<8x36xf32>, vector<36x16xf32>, vector<8x16xf32> -> vector<8x16xf32>
    %c4 = arith.constant 4 : index
    %c0_23 = arith.constant 0 : index
    %c0_24 = arith.constant 0 : index
    %20 = vector.load %arg1[%c4, %c0_23, %c0_24] : memref<32x8x36xf32, #tpu.memory_space<vmem>>, vector<1x8x36xf32>
    %21 = vector.shape_cast %20 : vector<1x8x36xf32> to vector<8x36xf32>
    %c4_25 = arith.constant 4 : index
    %c0_26 = arith.constant 0 : index
    %c0_27 = arith.constant 0 : index
    %22 = vector.load %arg2[%c4_25, %c0_26, %c0_27] : memref<32x36x16xf32, #tpu.memory_space<vmem>>, vector<1x36x16xf32>
    %23 = vector.shape_cast %22 : vector<1x36x16xf32> to vector<36x16xf32>
    %cst_28 = arith.constant dense<0.000000e+00> : vector<8x16xf32>
    %24 = tpu.matmul %21, %23, %cst_28 {dimension_numbers = #tpu.dot_dimension_numbers<[1], [0], [0], [1], [0, 0, 1, 1], [], []>} : vector<8x36xf32>, vector<36x16xf32>, vector<8x16xf32> -> vector<8x16xf32>
    %c5 = arith.constant 5 : index
    %c0_29 = arith.constant 0 : index
    %c0_30 = arith.constant 0 : index
    %25 = vector.load %arg1[%c5, %c0_29, %c0_30] : memref<32x8x36xf32, #tpu.memory_space<vmem>>, vector<1x8x36xf32>
    %26 = vector.shape_cast %25 : vector<1x8x36xf32> to vector<8x36xf32>
    %c5_31 = arith.constant 5 : index
    %c0_32 = arith.constant 0 : index
    %c0_33 = arith.constant 0 : index
    %27 = vector.load %arg2[%c5_31, %c0_32, %c0_33] : memref<32x36x16xf32, #tpu.memory_space<vmem>>, vector<1x36x16xf32>
    %28 = vector.shape_cast %27 : vector<1x36x16xf32> to vector<36x16xf32>
    %cst_34 = arith.constant dense<0.000000e+00> : vector<8x16xf32>
    %29 = tpu.matmul %26, %28, %cst_34 {dimension_numbers = #tpu.dot_dimension_numbers<[1], [0], [0], [1], [0, 0, 1, 1], [], []>} : vector<8x36xf32>, vector<36x16xf32>, vector<8x16xf32> -> vector<8x16xf32>
    %c6 = arith.constant 6 : index
    %c0_35 = arith.constant 0 : index
    %c0_36 = arith.constant 0 : index
    %30 = vector.load %arg1[%c6, %c0_35, %c0_36] : memref<32x8x36xf32, #tpu.memory_space<vmem>>, vector<1x8x36xf32>
    %31 = vector.shape_cast %30 : vector<1x8x36xf32> to vector<8x36xf32>
    %c6_37 = arith.constant 6 : index
    %c0_38 = arith.constant 0 : index
    %c0_39 = arith.constant 0 : index
    %32 = vector.load %arg2[%c6_37, %c0_38, %c0_39] : memref<32x36x16xf32, #tpu.memory_space<vmem>>, vector<1x36x16xf32>
    %33 = vector.shape_cast %32 : vector<1x36x16xf32> to vector<36x16xf32>
    %cst_40 = arith.constant dense<0.000000e+00> : vector<8x16xf32>
    %34 = tpu.matmul %31, %33, %cst_40 {dimension_numbers = #tpu.dot_dimension_numbers<[1], [0], [0], [1], [0, 0, 1, 1], [], []>} : vector<8x36xf32>, vector<36x16xf32>, vector<8x16xf32> -> vector<8x16xf32>
    %c7 = arith.constant 7 : index
    %c0_41 = arith.constant 0 : index
    %c0_42 = arith.constant 0 : index
    %35 = vector.load %arg1[%c7, %c0_41, %c0_42] : memref<32x8x36xf32, #tpu.memory_space<vmem>>, vector<1x8x36xf32>
    %36 = vector.shape_cast %35 : vector<1x8x36xf32> to vector<8x36xf32>
    %c7_43 = arith.constant 7 : index
    %c0_44 = arith.constant 0 : index
    %c0_45 = arith.constant 0 : index
    %37 = vector.load %arg2[%c7_43, %c0_44, %c0_45] : memref<32x36x16xf32, #tpu.memory_space<vmem>>, vector<1x36x16xf32>
    %38 = vector.shape_cast %37 : vector<1x36x16xf32> to vector<36x16xf32>
    %cst_46 = arith.constant dense<0.000000e+00> : vector<8x16xf32>
    %39 = tpu.matmul %36, %38, %cst_46 {dimension_numbers = #tpu.dot_dimension_numbers<[1], [0], [0], [1], [0, 0, 1, 1], [], []>} : vector<8x36xf32>, vector<36x16xf32>, vector<8x16xf32> -> vector<8x16xf32>
    %40 = tpu.concatenate %4, %9, %14, %19, %24, %29, %34, %39 in 1 : vector<8x16xf32>, vector<8x16xf32>, vector<8x16xf32>, vector<8x16xf32>, vector<8x16xf32>, vector<8x16xf32>, vector<8x16xf32>, vector<8x16xf32> -> vector<8x128xf32>
    %c0_47 = arith.constant 0 : index
    %c0_48 = arith.constant 0 : index
    %c0_49 = arith.constant 0 : index
    %41 = vector.load %arg3[%c0_47, %c0_48, %c0_49] : memref<1x8x512xf32, #tpu.memory_space<vmem>>, vector<1x8x128xf32>
    %42 = vector.shape_cast %41 : vector<1x8x128xf32> to vector<8x128xf32>
    %43 = arith.addf %40, %42 : vector<8x128xf32>
    %c0_50 = arith.constant 0 : index
    %c0_51 = arith.constant 0 : index
    %c0_52 = arith.constant 0 : index
    %44 = vector.load %arg4[%c0_50, %c0_51, %c0_52] : memref<1x8x512xf32, #tpu.memory_space<vmem>>, vector<1x8x128xf32>
    %45 = vector.shape_cast %44 : vector<1x8x128xf32> to vector<8x128xf32>
    %46 = vector.shape_cast %43 : vector<8x128xf32> to vector<1x8x128xf32>
    tpu.vector_store %arg4[%c0_50, %c0_51, %c0_52], %46 {strides = array<i32>} : memref<1x8x512xf32, #tpu.memory_space<vmem>>, vector<1x8x128xf32>,
    %c8 = arith.constant 8 : index
    %c0_53 = arith.constant 0 : index
    %c0_54 = arith.constant 0 : index
    %47 = vector.load %arg1[%c8, %c0_53, %c0_54] : memref<32x8x36xf32, #tpu.memory_space<vmem>>, vector<1x8x36xf32>
    %48 = vector.shape_cast %47 : vector<1x8x36xf32> to vector<8x36xf32>
    %c8_55 = arith.constant 8 : index
    %c0_56 = arith.constant 0 : index
    %c0_57 = arith.constant 0 : index
    %49 = vector.load %arg2[%c8_55, %c0_56, %c0_57] : memref<32x36x16xf32, #tpu.memory_space<vmem>>, vector<1x36x16xf32>
    %50 = vector.shape_cast %49 : vector<1x36x16xf32> to vector<36x16xf32>
    %cst_58 = arith.constant dense<0.000000e+00> : vector<8x16xf32>
    %51 = tpu.matmul %48, %50, %cst_58 {dimension_numbers = #tpu.dot_dimension_numbers<[1], [0], [0], [1], [0, 0, 1, 1], [], []>} : vector<8x36xf32>, vector<36x16xf32>, vector<8x16xf32> -> vector<8x16xf32>
    %c9 = arith.constant 9 : index
    %c0_59 = arith.constant 0 : index
    %c0_60 = arith.constant 0 : index
    %52 = vector.load %arg1[%c9, %c0_59, %c0_60] : memref<32x8x36xf32, #tpu.memory_space<vmem>>, vector<1x8x36xf32>
    %53 = vector.shape_cast %52 : vector<1x8x36xf32> to vector<8x36xf32>
    %c9_61 = arith.constant 9 : index
    %c0_62 = arith.constant 0 : index
    %c0_63 = arith.constant 0 : index
    %54 = vector.load %arg2[%c9_61, %c0_62, %c0_63] : memref<32x36x16xf32, #tpu.memory_space<vmem>>, vector<1x36x16xf32>
    %55 = vector.shape_cast %54 : vector<1x36x16xf32> to vector<36x16xf32>
    %cst_64 = arith.constant dense<0.000000e+00> : vector<8x16xf32>
    %56 = tpu.matmul %53, %55, %cst_64 {dimension_numbers = #tpu.dot_dimension_numbers<[1], [0], [0], [1], [0, 0, 1, 1], [], []>} : vector<8x36xf32>, vector<36x16xf32>, vector<8x16xf32> -> vector<8x16xf32>
    %c10 = arith.constant 10 : index
    %c0_65 = arith.constant 0 : index
    %c0_66 = arith.constant 0 : index
    %57 = vector.load %arg1[%c10, %c0_65, %c0_66] : memref<32x8x36xf32, #tpu.memory_space<vmem>>, vector<1x8x36xf32>
    %58 = vector.shape_cast %57 : vector<1x8x36xf32> to vector<8x36xf32>
    %c10_67 = arith.constant 10 : index
    %c0_68 = arith.constant 0 : index
    %c0_69 = arith.constant 0 : index
    %59 = vector.load %arg2[%c10_67, %c0_68, %c0_69] : memref<32x36x16xf32, #tpu.memory_space<vmem>>, vector<1x36x16xf32>
    %60 = vector.shape_cast %59 : vector<1x36x16xf32> to vector<36x16xf32>
    %cst_70 = arith.constant dense<0.000000e+00> : vector<8x16xf32>
    %61 = tpu.matmul %58, %60, %cst_70 {dimension_numbers = #tpu.dot_dimension_numbers<[1], [0], [0], [1], [0, 0, 1, 1], [], []>} : vector<8x36xf32>, vector<36x16xf32>, vector<8x16xf32> -> vector<8x16xf32>
    %c11 = arith.constant 11 : index
    %c0_71 = arith.constant 0 : index
    %c0_72 = arith.constant 0 : index
    %62 = vector.load %arg1[%c11, %c0_71, %c0_72] : memref<32x8x36xf32, #tpu.memory_space<vmem>>, vector<1x8x36xf32>
    %63 = vector.shape_cast %62 : vector<1x8x36xf32> to vector<8x36xf32>
    %c11_73 = arith.constant 11 : index
    %c0_74 = arith.constant 0 : index
    %c0_75 = arith.constant 0 : index
    %64 = vector.load %arg2[%c11_73, %c0_74, %c0_75] : memref<32x36x16xf32, #tpu.memory_space<vmem>>, vector<1x36x16xf32>
    %65 = vector.shape_cast %64 : vector<1x36x16xf32> to vector<36x16xf32>
    %cst_76 = arith.constant dense<0.000000e+00> : vector<8x16xf32>
    %66 = tpu.matmul %63, %65, %cst_76 {dimension_numbers = #tpu.dot_dimension_numbers<[1], [0], [0], [1], [0, 0, 1, 1], [], []>} : vector<8x36xf32>, vector<36x16xf32>, vector<8x16xf32> -> vector<8x16xf32>
    %c12 = arith.constant 12 : index
    %c0_77 = arith.constant 0 : index
    %c0_78 = arith.constant 0 : index
    %67 = vector.load %arg1[%c12, %c0_77, %c0_78] : memref<32x8x36xf32, #tpu.memory_space<vmem>>, vector<1x8x36xf32>
    %68 = vector.shape_cast %67 : vector<1x8x36xf32> to vector<8x36xf32>
    %c12_79 = arith.constant 12 : index
    %c0_80 = arith.constant 0 : index
    %c0_81 = arith.constant 0 : index
    %69 = vector.load %arg2[%c12_79, %c0_80, %c0_81] : memref<32x36x16xf32, #tpu.memory_space<vmem>>, vector<1x36x16xf32>
    %70 = vector.shape_cast %69 : vector<1x36x16xf32> to vector<36x16xf32>
    %cst_82 = arith.constant dense<0.000000e+00> : vector<8x16xf32>
    %71 = tpu.matmul %68, %70, %cst_82 {dimension_numbers = #tpu.dot_dimension_numbers<[1], [0], [0], [1], [0, 0, 1, 1], [], []>} : vector<8x36xf32>, vector<36x16xf32>, vector<8x16xf32> -> vector<8x16xf32>
    %c13 = arith.constant 13 : index
    %c0_83 = arith.constant 0 : index
    %c0_84 = arith.constant 0 : index
    %72 = vector.load %arg1[%c13, %c0_83, %c0_84] : memref<32x8x36xf32, #tpu.memory_space<vmem>>, vector<1x8x36xf32>
    %73 = vector.shape_cast %72 : vector<1x8x36xf32> to vector<8x36xf32>
    %c13_85 = arith.constant 13 : index
    %c0_86 = arith.constant 0 : index
    %c0_87 = arith.constant 0 : index
    %74 = vector.load %arg2[%c13_85, %c0_86, %c0_87] : memref<32x36x16xf32, #tpu.memory_space<vmem>>, vector<1x36x16xf32>
    %75 = vector.shape_cast %74 : vector<1x36x16xf32> to vector<36x16xf32>
    %cst_88 = arith.constant dense<0.000000e+00> : vector<8x16xf32>
    %76 = tpu.matmul %73, %75, %cst_88 {dimension_numbers = #tpu.dot_dimension_numbers<[1], [0], [0], [1], [0, 0, 1, 1], [], []>} : vector<8x36xf32>, vector<36x16xf32>, vector<8x16xf32> -> vector<8x16xf32>
    %c14 = arith.constant 14 : index
    %c0_89 = arith.constant 0 : index
    %c0_90 = arith.constant 0 : index
    %77 = vector.load %arg1[%c14, %c0_89, %c0_90] : memref<32x8x36xf32, #tpu.memory_space<vmem>>, vector<1x8x36xf32>
    %78 = vector.shape_cast %77 : vector<1x8x36xf32> to vector<8x36xf32>
    %c14_91 = arith.constant 14 : index
    %c0_92 = arith.constant 0 : index
    %c0_93 = arith.constant 0 : index
    %79 = vector.load %arg2[%c14_91, %c0_92, %c0_93] : memref<32x36x16xf32, #tpu.memory_space<vmem>>, vector<1x36x16xf32>
    %80 = vector.shape_cast %79 : vector<1x36x16xf32> to vector<36x16xf32>
    %cst_94 = arith.constant dense<0.000000e+00> : vector<8x16xf32>
    %81 = tpu.matmul %78, %80, %cst_94 {dimension_numbers = #tpu.dot_dimension_numbers<[1], [0], [0], [1], [0, 0, 1, 1], [], []>} : vector<8x36xf32>, vector<36x16xf32>, vector<8x16xf32> -> vector<8x16xf32>
    %c15 = arith.constant 15 : index
    %c0_95 = arith.constant 0 : index
    %c0_96 = arith.constant 0 : index
    %82 = vector.load %arg1[%c15, %c0_95, %c0_96] : memref<32x8x36xf32, #tpu.memory_space<vmem>>, vector<1x8x36xf32>
    %83 = vector.shape_cast %82 : vector<1x8x36xf32> to vector<8x36xf32>
    %c15_97 = arith.constant 15 : index
    %c0_98 = arith.constant 0 : index
    %c0_99 = arith.constant 0 : index
    %84 = vector.load %arg2[%c15_97, %c0_98, %c0_99] : memref<32x36x16xf32, #tpu.memory_space<vmem>>, vector<1x36x16xf32>
    %85 = vector.shape_cast %84 : vector<1x36x16xf32> to vector<36x16xf32>
    %cst_100 = arith.constant dense<0.000000e+00> : vector<8x16xf32>
    %86 = tpu.matmul %83, %85, %cst_100 {dimension_numbers = #tpu.dot_dimension_numbers<[1], [0], [0], [1], [0, 0, 1, 1], [], []>} : vector<8x36xf32>, vector<36x16xf32>, vector<8x16xf32> -> vector<8x16xf32>
    %87 = tpu.concatenate %51, %56, %61, %66, %71, %76, %81, %86 in 1 : vector<8x16xf32>, vector<8x16xf32>, vector<8x16xf32>, vector<8x16xf32>, vector<8x16xf32>, vector<8x16xf32>, vector<8x16xf32>, vector<8x16xf32> -> vector<8x128xf32>
    %c0_101 = arith.constant 0 : index
    %c0_102 = arith.constant 0 : index
    %c128 = arith.constant 128 : index
    %88 = vector.load %arg3[%c0_101, %c0_102, %c128] : memref<1x8x512xf32, #tpu.memory_space<vmem>>, vector<1x8x128xf32>
    %89 = vector.shape_cast %88 : vector<1x8x128xf32> to vector<8x128xf32>
    %90 = arith.addf %87, %89 : vector<8x128xf32>
    %c0_103 = arith.constant 0 : index
    %c0_104 = arith.constant 0 : index
    %c128_105 = arith.constant 128 : index
    %91 = vector.load %arg4[%c0_103, %c0_104, %c128_105] : memref<1x8x512xf32, #tpu.memory_space<vmem>>, vector<1x8x128xf32>
    %92 = vector.shape_cast %91 : vector<1x8x128xf32> to vector<8x128xf32>
    %93 = vector.shape_cast %90 : vector<8x128xf32> to vector<1x8x128xf32>
    tpu.vector_store %arg4[%c0_103, %c0_104, %c128_105], %93 {strides = array<i32>} : memref<1x8x512xf32, #tpu.memory_space<vmem>>, vector<1x8x128xf32>,
    %c16 = arith.constant 16 : index
    %c0_106 = arith.constant 0 : index
    %c0_107 = arith.constant 0 : index
    %94 = vector.load %arg1[%c16, %c0_106, %c0_107] : memref<32x8x36xf32, #tpu.memory_space<vmem>>, vector<1x8x36xf32>
    %95 = vector.shape_cast %94 : vector<1x8x36xf32> to vector<8x36xf32>
    %c16_108 = arith.constant 16 : index
    %c0_109 = arith.constant 0 : index
    %c0_110 = arith.constant 0 : index
    %96 = vector.load %arg2[%c16_108, %c0_109, %c0_110] : memref<32x36x16xf32, #tpu.memory_space<vmem>>, vector<1x36x16xf32>
    %97 = vector.shape_cast %96 : vector<1x36x16xf32> to vector<36x16xf32>
    %cst_111 = arith.constant dense<0.000000e+00> : vector<8x16xf32>
    %98 = tpu.matmul %95, %97, %cst_111 {dimension_numbers = #tpu.dot_dimension_numbers<[1], [0], [0], [1], [0, 0, 1, 1], [], []>} : vector<8x36xf32>, vector<36x16xf32>, vector<8x16xf32> -> vector<8x16xf32>
    %c17 = arith.constant 17 : index
    %c0_112 = arith.constant 0 : index
    %c0_113 = arith.constant 0 : index
    %99 = vector.load %arg1[%c17, %c0_112, %c0_113] : memref<32x8x36xf32, #tpu.memory_space<vmem>>, vector<1x8x36xf32>
    %100 = vector.shape_cast %99 : vector<1x8x36xf32> to vector<8x36xf32>
    %c17_114 = arith.constant 17 : index
    %c0_115 = arith.constant 0 : index
    %c0_116 = arith.constant 0 : index
    %101 = vector.load %arg2[%c17_114, %c0_115, %c0_116] : memref<32x36x16xf32, #tpu.memory_space<vmem>>, vector<1x36x16xf32>
    %102 = vector.shape_cast %101 : vector<1x36x16xf32> to vector<36x16xf32>
    %cst_117 = arith.constant dense<0.000000e+00> : vector<8x16xf32>
    %103 = tpu.matmul %100, %102, %cst_117 {dimension_numbers = #tpu.dot_dimension_numbers<[1], [0], [0], [1], [0, 0, 1, 1], [], []>} : vector<8x36xf32>, vector<36x16xf32>, vector<8x16xf32> -> vector<8x16xf32>
    %c18 = arith.constant 18 : index
    %c0_118 = arith.constant 0 : index
    %c0_119 = arith.constant 0 : index
    %104 = vector.load %arg1[%c18, %c0_118, %c0_119] : memref<32x8x36xf32, #tpu.memory_space<vmem>>, vector<1x8x36xf32>
    %105 = vector.shape_cast %104 : vector<1x8x36xf32> to vector<8x36xf32>
    %c18_120 = arith.constant 18 : index
    %c0_121 = arith.constant 0 : index
    %c0_122 = arith.constant 0 : index
    %106 = vector.load %arg2[%c18_120, %c0_121, %c0_122] : memref<32x36x16xf32, #tpu.memory_space<vmem>>, vector<1x36x16xf32>
    %107 = vector.shape_cast %106 : vector<1x36x16xf32> to vector<36x16xf32>
    %cst_123 = arith.constant dense<0.000000e+00> : vector<8x16xf32>
    %108 = tpu.matmul %105, %107, %cst_123 {dimension_numbers = #tpu.dot_dimension_numbers<[1], [0], [0], [1], [0, 0, 1, 1], [], []>} : vector<8x36xf32>, vector<36x16xf32>, vector<8x16xf32> -> vector<8x16xf32>
    %c19 = arith.constant 19 : index
    %c0_124 = arith.constant 0 : index
    %c0_125 = arith.constant 0 : index
    %109 = vector.load %arg1[%c19, %c0_124, %c0_125] : memref<32x8x36xf32, #tpu.memory_space<vmem>>, vector<1x8x36xf32>
    %110 = vector.shape_cast %109 : vector<1x8x36xf32> to vector<8x36xf32>
    %c19_126 = arith.constant 19 : index
    %c0_127 = arith.constant 0 : index
    %c0_128 = arith.constant 0 : index
    %111 = vector.load %arg2[%c19_126, %c0_127, %c0_128] : memref<32x36x16xf32, #tpu.memory_space<vmem>>, vector<1x36x16xf32>
    %112 = vector.shape_cast %111 : vector<1x36x16xf32> to vector<36x16xf32>
    %cst_129 = arith.constant dense<0.000000e+00> : vector<8x16xf32>
    %113 = tpu.matmul %110, %112, %cst_129 {dimension_numbers = #tpu.dot_dimension_numbers<[1], [0], [0], [1], [0, 0, 1, 1], [], []>} : vector<8x36xf32>, vector<36x16xf32>, vector<8x16xf32> -> vector<8x16xf32>
    %c20 = arith.constant 20 : index
    %c0_130 = arith.constant 0 : index
    %c0_131 = arith.constant 0 : index
    %114 = vector.load %arg1[%c20, %c0_130, %c0_131] : memref<32x8x36xf32, #tpu.memory_space<vmem>>, vector<1x8x36xf32>
    %115 = vector.shape_cast %114 : vector<1x8x36xf32> to vector<8x36xf32>
    %c20_132 = arith.constant 20 : index
    %c0_133 = arith.constant 0 : index
    %c0_134 = arith.constant 0 : index
    %116 = vector.load %arg2[%c20_132, %c0_133, %c0_134] : memref<32x36x16xf32, #tpu.memory_space<vmem>>, vector<1x36x16xf32>
    %117 = vector.shape_cast %116 : vector<1x36x16xf32> to vector<36x16xf32>
    %cst_135 = arith.constant dense<0.000000e+00> : vector<8x16xf32>
    %118 = tpu.matmul %115, %117, %cst_135 {dimension_numbers = #tpu.dot_dimension_numbers<[1], [0], [0], [1], [0, 0, 1, 1], [], []>} : vector<8x36xf32>, vector<36x16xf32>, vector<8x16xf32> -> vector<8x16xf32>
    %c21 = arith.constant 21 : index
    %c0_136 = arith.constant 0 : index
    %c0_137 = arith.constant 0 : index
    %119 = vector.load %arg1[%c21, %c0_136, %c0_137] : memref<32x8x36xf32, #tpu.memory_space<vmem>>, vector<1x8x36xf32>
    %120 = vector.shape_cast %119 : vector<1x8x36xf32> to vector<8x36xf32>
    %c21_138 = arith.constant 21 : index
    %c0_139 = arith.constant 0 : index
    %c0_140 = arith.constant 0 : index
    %121 = vector.load %arg2[%c21_138, %c0_139, %c0_140] : memref<32x36x16xf32, #tpu.memory_space<vmem>>, vector<1x36x16xf32>
    %122 = vector.shape_cast %121 : vector<1x36x16xf32> to vector<36x16xf32>
    %cst_141 = arith.constant dense<0.000000e+00> : vector<8x16xf32>
    %123 = tpu.matmul %120, %122, %cst_141 {dimension_numbers = #tpu.dot_dimension_numbers<[1], [0], [0], [1], [0, 0, 1, 1], [], []>} : vector<8x36xf32>, vector<36x16xf32>, vector<8x16xf32> -> vector<8x16xf32>
    %c22 = arith.constant 22 : index
    %c0_142 = arith.constant 0 : index
    %c0_143 = arith.constant 0 : index
    %124 = vector.load %arg1[%c22, %c0_142, %c0_143] : memref<32x8x36xf32, #tpu.memory_space<vmem>>, vector<1x8x36xf32>
    %125 = vector.shape_cast %124 : vector<1x8x36xf32> to vector<8x36xf32>
    %c22_144 = arith.constant 22 : index
    %c0_145 = arith.constant 0 : index
    %c0_146 = arith.constant 0 : index
    %126 = vector.load %arg2[%c22_144, %c0_145, %c0_146] : memref<32x36x16xf32, #tpu.memory_space<vmem>>, vector<1x36x16xf32>
    %127 = vector.shape_cast %126 : vector<1x36x16xf32> to vector<36x16xf32>
    %cst_147 = arith.constant dense<0.000000e+00> : vector<8x16xf32>
    %128 = tpu.matmul %125, %127, %cst_147 {dimension_numbers = #tpu.dot_dimension_numbers<[1], [0], [0], [1], [0, 0, 1, 1], [], []>} : vector<8x36xf32>, vector<36x16xf32>, vector<8x16xf32> -> vector<8x16xf32>
    %c23 = arith.constant 23 : index
    %c0_148 = arith.constant 0 : index
    %c0_149 = arith.constant 0 : index
    %129 = vector.load %arg1[%c23, %c0_148, %c0_149] : memref<32x8x36xf32, #tpu.memory_space<vmem>>, vector<1x8x36xf32>
    %130 = vector.shape_cast %129 : vector<1x8x36xf32> to vector<8x36xf32>
    %c23_150 = arith.constant 23 : index
    %c0_151 = arith.constant 0 : index
    %c0_152 = arith.constant 0 : index
    %131 = vector.load %arg2[%c23_150, %c0_151, %c0_152] : memref<32x36x16xf32, #tpu.memory_space<vmem>>, vector<1x36x16xf32>
    %132 = vector.shape_cast %131 : vector<1x36x16xf32> to vector<36x16xf32>
    %cst_153 = arith.constant dense<0.000000e+00> : vector<8x16xf32>
    %133 = tpu.matmul %130, %132, %cst_153 {dimension_numbers = #tpu.dot_dimension_numbers<[1], [0], [0], [1], [0, 0, 1, 1], [], []>} : vector<8x36xf32>, vector<36x16xf32>, vector<8x16xf32> -> vector<8x16xf32>
    %134 = tpu.concatenate %98, %103, %108, %113, %118, %123, %128, %133 in 1 : vector<8x16xf32>, vector<8x16xf32>, vector<8x16xf32>, vector<8x16xf32>, vector<8x16xf32>, vector<8x16xf32>, vector<8x16xf32>, vector<8x16xf32> -> vector<8x128xf32>
    %c0_154 = arith.constant 0 : index
    %c0_155 = arith.constant 0 : index
    %c256 = arith.constant 256 : index
    %135 = vector.load %arg3[%c0_154, %c0_155, %c256] : memref<1x8x512xf32, #tpu.memory_space<vmem>>, vector<1x8x128xf32>
    %136 = vector.shape_cast %135 : vector<1x8x128xf32> to vector<8x128xf32>
    %137 = arith.addf %134, %136 : vector<8x128xf32>
    %c0_156 = arith.constant 0 : index
    %c0_157 = arith.constant 0 : index
    %c256_158 = arith.constant 256 : index
    %138 = vector.load %arg4[%c0_156, %c0_157, %c256_158] : memref<1x8x512xf32, #tpu.memory_space<vmem>>, vector<1x8x128xf32>
    %139 = vector.shape_cast %138 : vector<1x8x128xf32> to vector<8x128xf32>
    %140 = vector.shape_cast %137 : vector<8x128xf32> to vector<1x8x128xf32>
    tpu.vector_store %arg4[%c0_156, %c0_157, %c256_158], %140 {strides = array<i32>} : memref<1x8x512xf32, #tpu.memory_space<vmem>>, vector<1x8x128xf32>,
    %c24 = arith.constant 24 : index
    %c0_159 = arith.constant 0 : index
    %c0_160 = arith.constant 0 : index
    %141 = vector.load %arg1[%c24, %c0_159, %c0_160] : memref<32x8x36xf32, #tpu.memory_space<vmem>>, vector<1x8x36xf32>
    %142 = vector.shape_cast %141 : vector<1x8x36xf32> to vector<8x36xf32>
    %c24_161 = arith.constant 24 : index
    %c0_162 = arith.constant 0 : index
    %c0_163 = arith.constant 0 : index
    %143 = vector.load %arg2[%c24_161, %c0_162, %c0_163] : memref<32x36x16xf32, #tpu.memory_space<vmem>>, vector<1x36x16xf32>
    %144 = vector.shape_cast %143 : vector<1x36x16xf32> to vector<36x16xf32>
    %cst_164 = arith.constant dense<0.000000e+00> : vector<8x16xf32>
    %145 = tpu.matmul %142, %144, %cst_164 {dimension_numbers = #tpu.dot_dimension_numbers<[1], [0], [0], [1], [0, 0, 1, 1], [], []>} : vector<8x36xf32>, vector<36x16xf32>, vector<8x16xf32> -> vector<8x16xf32>
    %c25 = arith.constant 25 : index
    %c0_165 = arith.constant 0 : index
    %c0_166 = arith.constant 0 : index
    %146 = vector.load %arg1[%c25, %c0_165, %c0_166] : memref<32x8x36xf32, #tpu.memory_space<vmem>>, vector<1x8x36xf32>
    %147 = vector.shape_cast %146 : vector<1x8x36xf32> to vector<8x36xf32>
    %c25_167 = arith.constant 25 : index
    %c0_168 = arith.constant 0 : index
    %c0_169 = arith.constant 0 : index
    %148 = vector.load %arg2[%c25_167, %c0_168, %c0_169] : memref<32x36x16xf32, #tpu.memory_space<vmem>>, vector<1x36x16xf32>
    %149 = vector.shape_cast %148 : vector<1x36x16xf32> to vector<36x16xf32>
    %cst_170 = arith.constant dense<0.000000e+00> : vector<8x16xf32>
    %150 = tpu.matmul %147, %149, %cst_170 {dimension_numbers = #tpu.dot_dimension_numbers<[1], [0], [0], [1], [0, 0, 1, 1], [], []>} : vector<8x36xf32>, vector<36x16xf32>, vector<8x16xf32> -> vector<8x16xf32>
    %c26 = arith.constant 26 : index
    %c0_171 = arith.constant 0 : index
    %c0_172 = arith.constant 0 : index
    %151 = vector.load %arg1[%c26, %c0_171, %c0_172] : memref<32x8x36xf32, #tpu.memory_space<vmem>>, vector<1x8x36xf32>
    %152 = vector.shape_cast %151 : vector<1x8x36xf32> to vector<8x36xf32>
    %c26_173 = arith.constant 26 : index
    %c0_174 = arith.constant 0 : index
    %c0_175 = arith.constant 0 : index
    %153 = vector.load %arg2[%c26_173, %c0_174, %c0_175] : memref<32x36x16xf32, #tpu.memory_space<vmem>>, vector<1x36x16xf32>
    %154 = vector.shape_cast %153 : vector<1x36x16xf32> to vector<36x16xf32>
    %cst_176 = arith.constant dense<0.000000e+00> : vector<8x16xf32>
    %155 = tpu.matmul %152, %154, %cst_176 {dimension_numbers = #tpu.dot_dimension_numbers<[1], [0], [0], [1], [0, 0, 1, 1], [], []>} : vector<8x36xf32>, vector<36x16xf32>, vector<8x16xf32> -> vector<8x16xf32>
    %c27 = arith.constant 27 : index
    %c0_177 = arith.constant 0 : index
    %c0_178 = arith.constant 0 : index
    %156 = vector.load %arg1[%c27, %c0_177, %c0_178] : memref<32x8x36xf32, #tpu.memory_space<vmem>>, vector<1x8x36xf32>
    %157 = vector.shape_cast %156 : vector<1x8x36xf32> to vector<8x36xf32>
    %c27_179 = arith.constant 27 : index
    %c0_180 = arith.constant 0 : index
    %c0_181 = arith.constant 0 : index
    %158 = vector.load %arg2[%c27_179, %c0_180, %c0_181] : memref<32x36x16xf32, #tpu.memory_space<vmem>>, vector<1x36x16xf32>
    %159 = vector.shape_cast %158 : vector<1x36x16xf32> to vector<36x16xf32>
    %cst_182 = arith.constant dense<0.000000e+00> : vector<8x16xf32>
    %160 = tpu.matmul %157, %159, %cst_182 {dimension_numbers = #tpu.dot_dimension_numbers<[1], [0], [0], [1], [0, 0, 1, 1], [], []>} : vector<8x36xf32>, vector<36x16xf32>, vector<8x16xf32> -> vector<8x16xf32>
    %c28 = arith.constant 28 : index
    %c0_183 = arith.constant 0 : index
    %c0_184 = arith.constant 0 : index
    %161 = vector.load %arg1[%c28, %c0_183, %c0_184] : memref<32x8x36xf32, #tpu.memory_space<vmem>>, vector<1x8x36xf32>
    %162 = vector.shape_cast %161 : vector<1x8x36xf32> to vector<8x36xf32>
    %c28_185 = arith.constant 28 : index
    %c0_186 = arith.constant 0 : index
    %c0_187 = arith.constant 0 : index
    %163 = vector.load %arg2[%c28_185, %c0_186, %c0_187] : memref<32x36x16xf32, #tpu.memory_space<vmem>>, vector<1x36x16xf32>
    %164 = vector.shape_cast %163 : vector<1x36x16xf32> to vector<36x16xf32>
    %cst_188 = arith.constant dense<0.000000e+00> : vector<8x16xf32>
    %165 = tpu.matmul %162, %164, %cst_188 {dimension_numbers = #tpu.dot_dimension_numbers<[1], [0], [0], [1], [0, 0, 1, 1], [], []>} : vector<8x36xf32>, vector<36x16xf32>, vector<8x16xf32> -> vector<8x16xf32>
    %c29 = arith.constant 29 : index
    %c0_189 = arith.constant 0 : index
    %c0_190 = arith.constant 0 : index
    %166 = vector.load %arg1[%c29, %c0_189, %c0_190] : memref<32x8x36xf32, #tpu.memory_space<vmem>>, vector<1x8x36xf32>
    %167 = vector.shape_cast %166 : vector<1x8x36xf32> to vector<8x36xf32>
    %c29_191 = arith.constant 29 : index
    %c0_192 = arith.constant 0 : index
    %c0_193 = arith.constant 0 : index
    %168 = vector.load %arg2[%c29_191, %c0_192, %c0_193] : memref<32x36x16xf32, #tpu.memory_space<vmem>>, vector<1x36x16xf32>
    %169 = vector.shape_cast %168 : vector<1x36x16xf32> to vector<36x16xf32>
    %cst_194 = arith.constant dense<0.000000e+00> : vector<8x16xf32>
    %170 = tpu.matmul %167, %169, %cst_194 {dimension_numbers = #tpu.dot_dimension_numbers<[1], [0], [0], [1], [0, 0, 1, 1], [], []>} : vector<8x36xf32>, vector<36x16xf32>, vector<8x16xf32> -> vector<8x16xf32>
    %c30 = arith.constant 30 : index
    %c0_195 = arith.constant 0 : index
    %c0_196 = arith.constant 0 : index
    %171 = vector.load %arg1[%c30, %c0_195, %c0_196] : memref<32x8x36xf32, #tpu.memory_space<vmem>>, vector<1x8x36xf32>
    %172 = vector.shape_cast %171 : vector<1x8x36xf32> to vector<8x36xf32>
    %c30_197 = arith.constant 30 : index
    %c0_198 = arith.constant 0 : index
    %c0_199 = arith.constant 0 : index
    %173 = vector.load %arg2[%c30_197, %c0_198, %c0_199] : memref<32x36x16xf32, #tpu.memory_space<vmem>>, vector<1x36x16xf32>
    %174 = vector.shape_cast %173 : vector<1x36x16xf32> to vector<36x16xf32>
    %cst_200 = arith.constant dense<0.000000e+00> : vector<8x16xf32>
    %175 = tpu.matmul %172, %174, %cst_200 {dimension_numbers = #tpu.dot_dimension_numbers<[1], [0], [0], [1], [0, 0, 1, 1], [], []>} : vector<8x36xf32>, vector<36x16xf32>, vector<8x16xf32> -> vector<8x16xf32>
    %c31 = arith.constant 31 : index
    %c0_201 = arith.constant 0 : index
    %c0_202 = arith.constant 0 : index
    %176 = vector.load %arg1[%c31, %c0_201, %c0_202] : memref<32x8x36xf32, #tpu.memory_space<vmem>>, vector<1x8x36xf32>
    %177 = vector.shape_cast %176 : vector<1x8x36xf32> to vector<8x36xf32>
    %c31_203 = arith.constant 31 : index
    %c0_204 = arith.constant 0 : index
    %c0_205 = arith.constant 0 : index
    %178 = vector.load %arg2[%c31_203, %c0_204, %c0_205] : memref<32x36x16xf32, #tpu.memory_space<vmem>>, vector<1x36x16xf32>
    %179 = vector.shape_cast %178 : vector<1x36x16xf32> to vector<36x16xf32>
    %cst_206 = arith.constant dense<0.000000e+00> : vector<8x16xf32>
    %180 = tpu.matmul %177, %179, %cst_206 {dimension_numbers = #tpu.dot_dimension_numbers<[1], [0], [0], [1], [0, 0, 1, 1], [], []>} : vector<8x36xf32>, vector<36x16xf32>, vector<8x16xf32> -> vector<8x16xf32>
    %181 = tpu.concatenate %145, %150, %155, %160, %165, %170, %175, %180 in 1 : vector<8x16xf32>, vector<8x16xf32>, vector<8x16xf32>, vector<8x16xf32>, vector<8x16xf32>, vector<8x16xf32>, vector<8x16xf32>, vector<8x16xf32> -> vector<8x128xf32>
    %c0_207 = arith.constant 0 : index
    %c0_208 = arith.constant 0 : index
    %c384 = arith.constant 384 : index
    %182 = vector.load %arg3[%c0_207, %c0_208, %c384] : memref<1x8x512xf32, #tpu.memory_space<vmem>>, vector<1x8x128xf32>
    %183 = vector.shape_cast %182 : vector<1x8x128xf32> to vector<8x128xf32>
    %184 = arith.addf %181, %183 : vector<8x128xf32>
    %c0_209 = arith.constant 0 : index
    %c0_210 = arith.constant 0 : index
    %c384_211 = arith.constant 384 : index
    %185 = vector.load %arg4[%c0_209, %c0_210, %c384_211] : memref<1x8x512xf32, #tpu.memory_space<vmem>>, vector<1x8x128xf32>
    %186 = vector.shape_cast %185 : vector<1x8x128xf32> to vector<8x128xf32>
    %187 = vector.shape_cast %184 : vector<8x128xf32> to vector<1x8x128xf32>
    tpu.vector_store %arg4[%c0_209, %c0_210, %c384_211], %187 {strides = array<i32>} : memref<1x8x512xf32, #tpu.memory_space<vmem>>, vector<1x8x128xf32>,
    return
  }
  func.func @transform_0(%arg0: i32) -> (i32, i32, i32) {
    %c0_i32 = arith.constant 0 : i32
    %c0_i32_0 = arith.constant 0 : i32
    %c0_i32_1 = arith.constant 0 : i32
    return %arg0, %c0_i32, %c0_i32_0 : i32, i32, i32
  }
  func.func @transform_1(%arg0: i32) -> (i32, i32, i32) {
    %c0_i32 = arith.constant 0 : i32
    %c0_i32_0 = arith.constant 0 : i32
    %c0_i32_1 = arith.constant 0 : i32
    return %arg0, %c0_i32, %c0_i32_0 : i32, i32, i32
  }
  func.func @transform_2(%arg0: i32) -> (i32, i32, i32) {
    %c0_i32 = arith.constant 0 : i32
    %c0_i32_0 = arith.constant 0 : i32
    %c0_i32_1 = arith.constant 0 : i32
    return %arg0, %c0_i32, %c0_i32_0 : i32, i32, i32
  }
  func.func @transform_3(%arg0: i32) -> (i32, i32, i32) {
    %c0_i32 = arith.constant 0 : i32
    %c0_i32_0 = arith.constant 0 : i32
    %c0_i32_1 = arith.constant 0 : i32
    return %arg0, %c0_i32, %c0_i32_0 : i32, i32, i32
  }
}

</mosaic_0001>

<bundles_post_ra>
// kernel: hyper_patch_forward.1
= control target key start
LH: loop header
LB: loop body
LE: loop exit
PB: predicated region body
PF: predicated region fallthrough
CT: control target
= control target key end

     0   :  { %v3925_v0 = vmov 0.0|0.0   ;;  %vm3926_vm0 = vmmov 0   ;;  %v3927_v8 = vmov 0.0   ;;  %vm24_vm1 = vcmask 1043456   ;;  %s3928_s18 = smov 16   ;;  %s3931_s19 = smov 64   ;;  %s4847_s1 = inlined_call_operand.vmem [shape: f32[32,36,16], index: 1, kind: input, shape index: {}]   ;;  %s4848_s0 = inlined_call_operand.vmem [shape: f32[32,8,36], index: 0, kind: input, shape index: {}]   ;;  %s4849_s2 = inlined_call_operand.vmem [shape: f32[1,8,512], index: 2, kind: input, shape index: {}]   ;;  %s4850_s3 = inlined_call_operand.vmem [shape: f32[1,8,512], index: 3, kind: output, shape index: {}]  }
   0x1   :  { %3723 = vmatprep.subr.bf16.mxu0 %v3925_v0  ;;  %3729 = vmatprep.subr.bf16.mxu1 %v3925_v0  ;;  %v15_v1 = vld [vmem:[%s4847_s1] sm:$0xff]  ;;  %v16_v2 = vld [vmem:[%s4847_s1 + $0x8] sm:$0xff]  ;;  %v2869_v5 = vld [vmem:[%s4847_s1 + $0x30] sm:$0xff]  ;;  %vm20_vm2 = vcmask 293888   ;;  %s3932_s20 = smov 80   ;;  %s3933_s21 = smov 96  }
   0x2   :  { %v2868_v3 = vld [vmem:[%s4847_s1 + $0x28] sm:$0xff]  ;;  %v3724_v4 = vpack.c.bf16 %v16_v2, %v15_v1  ;;  %v17_v6 = vld [vmem:[%s4847_s1 + $0x10] sm:$0xff]  ;;  %v18_v7 = vld [vmem:[%s4847_s1 + $0x18] sm:$0xff]  ;;  %3317 = vmatprep.mubr.msk.f32.mxu0 %vm3926_vm0, %v3927_v8  ;;  %3330 = vmatprep.mubr.msk.f32.mxu1 %vm3926_vm0, %v3927_v8  ;;  %s3934_s22 = smov 112   ;;  %vm714_vm3 = vcmask 130048   ;;  %vm716_vm4 = vcmask 261120  }
   0x3   :  { %v3730_v9 = vpack.c.bf16 %v2869_v5, %v2868_v3  ;;  %v2870_v10 = vld [vmem:[%s4847_s1 + $0x38] sm:$0xff]  ;;  %v2871_v11 = vld [vmem:[%s4847_s1 + $0x40] sm:$0xff]  ;;  %v3727_v12 = vpack.c.bf16 %v18_v7, %v17_v6  ;;  %v2876_v14 = vld [vmem:[%s4847_s1 + $0x50] sm:$0xff]  ;;  %vm718_vm5 = vcmask 392192   ;;  %vm720_vm6 = vcmask 523264  }
   0x4   :  { %3725 = vmatpush3.bf16.msra.mxu0 %v3724_v4  ;;  %v3733_v13 = vpack.c.bf16 %v2871_v11, %v2870_v10  ;;  %v2877_v15 = vld [vmem:[%s4847_s1 + $0x58] sm:$0xff]  ;;  %v19_v16 = vld [vmem:[%s4847_s1 + $0x20] sm:$0xf]  ;;  %v2872_v19 = vld [vmem:[%s4847_s1 + $0x48] sm:$0xf]  ;;  %vm722_vm7 = vcmask 654336  }
   0x5   :  { %3731 = vmatpush3.bf16.msra.mxu1 %v3730_v9  ;;  %3726 = vmatprep.subr.bf16.mxu0 %v3925_v0  ;;  %v2884_v17 = vld [vmem:[%s4847_s1 + $0x78] sm:$0xff]  ;;  %v2885_v18 = vld [vmem:[%s4847_s1 + $0x80] sm:$0xff]  ;;  %v2867_v21 = vld [vmem:[%s4848_s0 + $0x8] sm:$0xff]  ;;  %v3736_v22 = vpack.c.bf16 %v2877_v15, %v2876_v14  ;;  %vm724_vm8 = vcmask 785408   ;;  %vm726_vm9 = vcmask 916480  }
   0x6   :  { %3732 = vmatprep.subr.bf16.mxu1 %v3925_v0  ;;  %v14_v20 = vld [vmem:[%s4848_s0] sm:$0xff]  ;;  %v3742_v23 = vpack.c.bf16 %v2885_v18, %v2884_v17  ;;  %v2879_v25 = vld [vmem:[%s4847_s1 + $0x68] sm:$0xff]  ;;  %v2887_v27 = vld [vmem:[%s4847_s1 + $0x90] sm:$0xff] }
   0x7   :  { %v2878_v24 = vld [vmem:[%s4847_s1 + $0x60] sm:$0xff]  ;;  %v2886_v26 = vld [vmem:[%s4847_s1 + $0x88] sm:$0xff]  ;;  %v2880_v32 = vld [vmem:[%s4847_s1 + $0x70] sm:$0xf] }
   0x8   :  { %3728 = vmatpush3.bf16.msra.mxu0 %v3727_v12  ;;  %v3739_v28 = vpack.c.bf16 %v2879_v25, %v2878_v24  ;;  %v3745_v29 = vpack.c.bf16 %v2887_v27, %v2886_v26  ;;  %v2892_v30 = vld [vmem:[%s4847_s1 + $0xa0] sm:$0xff]  ;;  %v2893_v31 = vld [vmem:[%s4847_s1 + $0xa8] sm:$0xff]  ;;  %v2901_v34 = vld [vmem:[%s4847_s1 + $0xd0] sm:$0xff] }
   0x9   :  { %3734 = vmatpush3.bf16.msra.mxu1 %v3733_v13  ;;  %3315 = vmatprep.subr.mxu0 %v3927_v8  ;;  %v2900_v33 = vld [vmem:[%s4847_s1 + $0xc8] sm:$0xff]  ;;  %v2888_v35 = vld [vmem:[%s4847_s1 + $0x98] sm:$0xf]  ;;  %v2875_v36 = vld [vmem:[%s4848_s0 + $0x10] sm:$0xff]  ;;  %v3748_v37 = vpack.c.bf16 %v2893_v31, %v2892_v30 }
   0xa   :  { %3328 = vmatprep.subr.mxu1 %v3927_v8  ;;  %v2883_v38 = vld [vmem:[%s4848_s0 + $0x18] sm:$0xff]  ;;  %v3754_v39 = vpack.c.bf16 %v2901_v34, %v2900_v33  ;;  %v2894_v40 = vld [vmem:[%s4847_s1 + $0xb0] sm:$0xff]  ;;  %v2903_v43 = vld [vmem:[%s4847_s1 + $0xe0] sm:$0xff] }
   0xb   :  { %v2895_v41 = vld [vmem:[%s4847_s1 + $0xb8] sm:$0xff]  ;;  %v2908_v46 = vld [vmem:[%s4847_s1 + $0xf0] sm:$0xff]  ;;  %v2896_v48 = vld [vmem:[%s4847_s1 + $0xc0] sm:$0xf] }
   0xc   :  { %3316 = vmatpush3.msk.msra.mxu0 %vm24_vm1, %v19_v16  ;;  %v2902_v42 = vld [vmem:[%s4847_s1 + $0xd8] sm:$0xff]  ;;  %v3751_v44 = vpack.c.bf16 %v2895_v41, %v2894_v40  ;;  %v2917_v50 = vld [vmem:[%s4847_s1 + $0x120] sm:$0xff]  ;;  %v2904_v51 = vld [vmem:[%s4847_s1 + $0xe8] sm:$0xf] }
   0xd   :  { %3329 = vmatpush3.msk.msra.mxu1 %vm24_vm1, %v2872_v19  ;;  %3318 = vmatmul.mubr.msk.f32.vlgmr.msra.gmra.mrb[0].mxu0 %vm20_vm2, %v14_v20  ;;  %v3757_v45 = vpack.c.bf16 %v2903_v43, %v2902_v42  ;;  %v2909_v47 = vld [vmem:[%s4847_s1 + $0xf8] sm:$0xff]  ;;  %v2891_v52 = vld [vmem:[%s4848_s0 + $0x20] sm:$0xff]  ;;  %v2899_v54 = vld [vmem:[%s4848_s0 + $0x28] sm:$0xff] }
   0xe   :  { %3331 = vmatmul.mubr.msk.f32.vlgmr.msra.gmra.mrb[0].mxu1 %vm20_vm2, %v2867_v21  ;;  %3735 = vmatprep.subr.bf16.mxu0 %v3925_v0  ;;  %v2916_v49 = vld [vmem:[%s4847_s1 + $0x118] sm:$0xff]  ;;  %v3760_v53 = vpack.c.bf16 %v2909_v47, %v2908_v46  ;;  %v2910_v56 = vld [vmem:[%s4847_s1 + $0x100] sm:$0xff]  ;;  %v2911_v57 = vld [vmem:[%s4847_s1 + $0x108] sm:$0xff] }
   0xf   :  { %3741 = vmatprep.subr.bf16.mxu1 %v3925_v0  ;;  %3737 = vmatpush3.bf16.msra.mxu0 %v3736_v22  ;;  %v3766_v55 = vpack.c.bf16 %v2917_v50, %v2916_v49  ;;  %v2918_v58 = vld [vmem:[%s4847_s1 + $0x128] sm:$0xff]  ;;  %v2919_v59 = vld [vmem:[%s4847_s1 + $0x130] sm:$0xff]  ;;  %v3763_v60 = vpack.c.bf16 %v2911_v57, %v2910_v56  ;;  %v2924_v62 = vld [vmem:[%s4847_s1 + $0x140] sm:$0xff] }
  0x10   :  { %3743 = vmatpush3.bf16.msra.mxu1 %v3742_v23  ;;  %3738 = vmatprep.subr.bf16.mxu0 %v3925_v0  ;;  %v3769_v61 = vpack.c.bf16 %v2919_v59, %v2918_v58  ;;  %v2925_v63 = vld [vmem:[%s4847_s1 + $0x148] sm:$0xff]  ;;  %v2912_v1 = vld [vmem:[%s4847_s1 + $0x110] sm:$0xf]  ;;  %v2920_v4 = vld [vmem:[%s4847_s1 + $0x138] sm:$0xf] }
  0x11   :  { %3744 = vmatprep.subr.bf16.mxu1 %v3925_v0  ;;  %3343 = vmatprep.mubr.msk.f32.mxu0 %vm3926_vm0, %v3927_v8  ;;  %v2932_v2 = vld [vmem:[%s4847_s1 + $0x168] sm:$0xff]  ;;  %v2933_v3 = vld [vmem:[%s4847_s1 + $0x170] sm:$0xff]  ;;  %v3772_v6 = vpack.c.bf16 %v2925_v63, %v2924_v62  ;;  %v2915_v7 = vld [vmem:[%s4848_s0 + $0x38] sm:$0xff] }
  0x12   :  { %3356 = vmatprep.mubr.msk.f32.mxu1 %vm3926_vm0, %v3927_v8  ;;  %v2907_v5 = vld [vmem:[%s4848_s0 + $0x30] sm:$0xff]  ;;  %v3778_v9 = vpack.c.bf16 %v2933_v3, %v2932_v2  ;;  %v2927_v11 = vld [vmem:[%s4847_s1 + $0x158] sm:$0xff]  ;;  %v2935_v13 = vld [vmem:[%s4847_s1 + $0x180] sm:$0xff] }
  0x13   :  { %3740 = vmatpush3.bf16.msra.mxu0 %v3739_v28  ;;  %v2926_v10 = vld [vmem:[%s4847_s1 + $0x150] sm:$0xff]  ;;  %v2934_v12 = vld [vmem:[%s4847_s1 + $0x178] sm:$0xff]  ;;  %v2928_v18 = vld [vmem:[%s4847_s1 + $0x160] sm:$0xf] }
  0x14   :  { %3746 = vmatpush3.bf16.msra.mxu1 %v3745_v29  ;;  %3341 = vmatprep.subr.mxu0 %v3927_v8  ;;  %v3775_v14 = vpack.c.bf16 %v2927_v11, %v2926_v10  ;;  %v3781_v15 = vpack.c.bf16 %v2935_v13, %v2934_v12  ;;  %v2940_v16 = vld [vmem:[%s4847_s1 + $0x190] sm:$0xff]  ;;  %v2941_v17 = vld [vmem:[%s4847_s1 + $0x198] sm:$0xff]  ;;  %v2949_v20 = vld [vmem:[%s4847_s1 + $0x1c0] sm:$0xff] }
  0x15   :  { %3354 = vmatprep.subr.mxu1 %v3927_v8  ;;  %v2948_v19 = vld [vmem:[%s4847_s1 + $0x1b8] sm:$0xff]  ;;  %v2936_v21 = vld [vmem:[%s4847_s1 + $0x188] sm:$0xf]  ;;  %v2923_v22 = vld [vmem:[%s4848_s0 + $0x40] sm:$0xff]  ;;  %v3784_v24 = vpack.c.bf16 %v2941_v17, %v2940_v16 }
  0x16   :  { %v2931_v23 = vld [vmem:[%s4848_s0 + $0x48] sm:$0xff]  ;;  %v3790_v25 = vpack.c.bf16 %v2949_v20, %v2948_v19  ;;  %v2942_v26 = vld [vmem:[%s4847_s1 + $0x1a0] sm:$0xff]  ;;  %v2951_v29 = vld [vmem:[%s4847_s1 + $0x1d0] sm:$0xff] }
  0x17   :  { %3342 = vmatpush3.msk.msra.mxu0 %vm24_vm1, %v2880_v32  ;;  %v2943_v27 = vld [vmem:[%s4847_s1 + $0x1a8] sm:$0xff]  ;;  %v2956_v32 = vld [vmem:[%s4847_s1 + $0x1e0] sm:$0xff]  ;;  %v2944_v34 = vld [vmem:[%s4847_s1 + $0x1b0] sm:$0xf] }
  0x18   :  { %3355 = vmatpush3.msk.msra.mxu1 %vm24_vm1, %v2888_v35  ;;  %3344 = vmatmul.mubr.msk.f32.vlgmr.msra.gmra.mrb[2].mxu0 %vm20_vm2, %v2875_v36  ;;  %v2950_v28 = vld [vmem:[%s4847_s1 + $0x1c8] sm:$0xff]  ;;  %v3787_v30 = vpack.c.bf16 %v2943_v27, %v2942_v26  ;;  %v2965_v36 = vld [vmem:[%s4847_s1 + $0x210] sm:$0xff]  ;;  %v2947_v40 = vld [vmem:[%s4848_s0 + $0x58] sm:$0xff] }
  0x19   :  { %3747 = vmatprep.subr.bf16.mxu0 %v3925_v0  ;;  %3753 = vmatprep.subr.bf16.mxu1 %v3925_v0  ;;  %v3793_v31 = vpack.c.bf16 %v2951_v29, %v2950_v28  ;;  %v2957_v33 = vld [vmem:[%s4847_s1 + $0x1e8] sm:$0xff]  ;;  %v2958_v42 = vld [vmem:[%s4847_s1 + $0x1f0] sm:$0xff]  ;;  %v2959_v43 = vld [vmem:[%s4847_s1 + $0x1f8] sm:$0xff] }
  0x1a   :  { %3357 = vmatmul.mubr.msk.f32.vlgmr.msra.gmra.mrb[2].mxu1 %vm20_vm2, %v2883_v38  ;;  %3749 = vmatpush3.bf16.msra.mxu0 %v3748_v37  ;;  %v2964_v35 = vld [vmem:[%s4847_s1 + $0x208] sm:$0xff]  ;;  %v2952_v37 = vld [vmem:[%s4847_s1 + $0x1d8] sm:$0xf]  ;;  %v2939_v38 = vld [vmem:[%s4848_s0 + $0x50] sm:$0xff]  ;;  %v3799_v46 = vpack.c.bf16 %v2959_v43, %v2958_v42 }
  0x1b   :  { %3755 = vmatpush3.bf16.msra.mxu1 %v3754_v39  ;;  %3750 = vmatprep.subr.bf16.mxu0 %v3925_v0  ;;  %v3796_v39 = vpack.c.bf16 %v2957_v33, %v2956_v32  ;;  %v3802_v41 = vpack.c.bf16 %v2965_v36, %v2964_v35  ;;  %v2973_v49 = vld [vmem:[%s4847_s1 + $0x238] sm:$0xff]  ;;  %v2960_v50 = vld [vmem:[%s4847_s1 + $0x200] sm:$0xf]  ;;  %v2963_v56 = vld [vmem:[%s4848_s0 + $0x68] sm:$0xff] }
  0x1c   :  { %3756 = vmatprep.subr.bf16.mxu1 %v3925_v0  ;;  %3369 = vmatprep.mubr.msk.f32.mxu0 %vm3926_vm0, %v3927_v8  ;;  %v2974_v58 = vld [vmem:[%s4847_s1 + $0x240] sm:$0xff]  ;;  %v2975_v59 = vld [vmem:[%s4847_s1 + $0x248] sm:$0xff]  ;;  %v2976_v3 = vld [vmem:[%s4847_s1 + $0x250] sm:$0xf] }
  0x1d   :  { %3382 = vmatprep.mubr.msk.f32.mxu1 %vm3926_vm0, %v3927_v8  ;;  %v3811_v62 = vpack.c.bf16 %v2975_v59, %v2974_v58  ;;  %v2989_v2 = vld [vmem:[%s4847_s1 + $0x288] sm:$0xff]  ;;  %v2979_v10 = vld [vmem:[%s4848_s0 + $0x78] sm:$0xff]  ;;  %v2990_v12 = vld [vmem:[%s4847_s1 + $0x290] sm:$0xff] }
  0x1e   :  { %3752 = vmatpush3.bf16.msra.mxu0 %v3751_v44  ;;  %v2966_v44 = vld [vmem:[%s4847_s1 + $0x218] sm:$0xff]  ;;  %v2992_v20 = vld [vmem:[%s4847_s1 + $0x2a0] sm:$0xf]  ;;  %v3007_v29 = vld [vmem:[%s4847_s1 + $0x2e8] sm:$0xff] }
  0x1f   :  { %3758 = vmatpush3.bf16.msra.mxu1 %v3757_v45  ;;  %3367 = vmatprep.subr.mxu0 %v3927_v8  ;;  %v2967_v45 = vld [vmem:[%s4847_s1 + $0x220] sm:$0xff]  ;;  %v2991_v13 = vld [vmem:[%s4847_s1 + $0x298] sm:$0xff]  ;;  %v3021_v35 = vld [vmem:[%s4847_s1 + $0x328] sm:$0xff] }
  0x20   :  { %3380 = vmatprep.subr.mxu1 %v3927_v8  ;;  %v3805_v47 = vpack.c.bf16 %v2967_v45, %v2966_v44  ;;  %v3823_v16 = vpack.c.bf16 %v2991_v13, %v2990_v12  ;;  %v3005_v19 = vld [vmem:[%s4847_s1 + $0x2d8] sm:$0xff]  ;;  %v3006_v28 = vld [vmem:[%s4847_s1 + $0x2e0] sm:$0xff]  ;;  %v3008_v36 = vld [vmem:[%s4847_s1 + $0x2f0] sm:$0xf] }
  0x21   :  { %v3835_v32 = vpack.c.bf16 %v3007_v29, %v3006_v28  ;;  %v3011_v42 = vld [vmem:[%s4848_s0 + $0x98] sm:$0xff]  ;;  %v3022_v44 = vld [vmem:[%s4847_s1 + $0x330] sm:$0xff]  ;;  %v3027_v58 = vld [vmem:[%s4848_s0 + $0xa8] sm:$0xff] }
  0x22   :  { %3368 = vmatpush3.msk.msra.mxu0 %vm24_vm1, %v2896_v48  ;;  %v2972_v48 = vld [vmem:[%s4847_s1 + $0x230] sm:$0xff]  ;;  %v3023_v45 = vld [vmem:[%s4847_s1 + $0x338] sm:$0xff] }
  0x23   :  { %3381 = vmatpush3.msk.msra.mxu1 %vm24_vm1, %v2904_v51  ;;  %3370 = vmatmul.mubr.msk.f32.vlgmr.msra.gmra.mrb[4].mxu0 %vm20_vm2, %v2891_v52  ;;  %v2980_v51 = vld [vmem:[%s4847_s1 + $0x258] sm:$0xff]  ;;  %v2981_v52 = vld [vmem:[%s4847_s1 + $0x260] sm:$0xff] }
  0x24   :  { %3759 = vmatprep.subr.bf16.mxu0 %v3925_v0  ;;  %3765 = vmatprep.subr.bf16.mxu1 %v3925_v0  ;;  %v3814_v57 = vpack.c.bf16 %v2981_v52, %v2980_v51  ;;  %v3037_v51 = vld [vmem:[%s4847_s1 + $0x378] sm:$0xff]  ;;  %v3024_v52 = vld [vmem:[%s4847_s1 + $0x340] sm:$0xf] }
  0x25   :  { %3383 = vmatmul.mubr.msk.f32.vlgmr.msra.gmra.mrb[4].mxu1 %vm20_vm2, %v2899_v54  ;;  %3761 = vmatpush3.bf16.msra.mxu0 %v3760_v53  ;;  %v2968_v53 = vld [vmem:[%s4847_s1 + $0x228] sm:$0xf]  ;;  %v2955_v54 = vld [vmem:[%s4848_s0 + $0x60] sm:$0xff]  ;;  %v3043_v12 = vld [vmem:[%s4848_s0 + $0xb8] sm:$0xff] }
  0x26   :  { %3767 = vmatpush3.bf16.msra.mxu1 %v3766_v55  ;;  %3762 = vmatprep.subr.bf16.mxu0 %v3925_v0  ;;  %v3808_v55 = vpack.c.bf16 %v2973_v49, %v2972_v48  ;;  %v3847_v48 = vpack.c.bf16 %v3023_v45, %v3022_v44  ;;  %v3086_v44 = vld [vmem:[%s4847_s1 + $0x470] sm:$0xff]  ;;  %v3087_v45 = vld [vmem:[%s4847_s1 + $0x478] sm:$0xff] }
  0x27   :  { %3768 = vmatprep.subr.bf16.mxu1 %v3925_v0  ;;  %3395 = vmatprep.mubr.msk.f32.mxu0 %vm3926_vm0, %v3927_v8 }
  0x28   :  { %3408 = vmatprep.mubr.msk.f32.mxu1 %vm3926_vm0, %v3927_v8 }
  0x29   :  { %3764 = vmatpush3.bf16.msra.mxu0 %v3763_v60  ;;  %v2982_v60 = vld [vmem:[%s4847_s1 + $0x268] sm:$0xff] }
  0x2a   :  { %3770 = vmatpush3.bf16.msra.mxu1 %v3769_v61  ;;  %3393 = vmatprep.subr.mxu0 %v3927_v8  ;;  %v2983_v61 = vld [vmem:[%s4847_s1 + $0x270] sm:$0xff] }
  0x2b   :  { %3406 = vmatprep.subr.mxu1 %v3927_v8  ;;  %v3817_v63 = vpack.c.bf16 %v2983_v61, %v2982_v60  ;;  %v3038_v60 = vld [vmem:[%s4847_s1 + $0x380] sm:$0xff]  ;;  %v3039_v61 = vld [vmem:[%s4847_s1 + $0x388] sm:$0xff] }
  0x2d   :  { %3394 = vmatpush3.msk.msra.mxu0 %vm24_vm1, %v2912_v1  ;;  %v2988_v1 = vld [vmem:[%s4847_s1 + $0x280] sm:$0xff] }
  0x2e   :  { %3407 = vmatpush3.msk.msra.mxu1 %vm24_vm1, %v2920_v4  ;;  %3396 = vmatmul.mubr.msk.f32.vlgmr.msra.gmra.mrb[6].mxu0 %vm20_vm2, %v2907_v5  ;;  %v2996_v4 = vld [vmem:[%s4847_s1 + $0x2a8] sm:$0xff]  ;;  %v2997_v5 = vld [vmem:[%s4847_s1 + $0x2b0] sm:$0xff] }
  0x2f   :  { %3771 = vmatprep.subr.bf16.mxu0 %v3925_v0  ;;  %3777 = vmatprep.subr.bf16.mxu1 %v3925_v0  ;;  %v3826_v11 = vpack.c.bf16 %v2997_v5, %v2996_v4  ;;  %v3053_v4 = vld [vmem:[%s4847_s1 + $0x3c8] sm:$0xff]  ;;  %v3040_v5 = vld [vmem:[%s4847_s1 + $0x390] sm:$0xf] }
  0x30   :  { %3409 = vmatmul.mubr.msk.f32.vlgmr.msra.gmra.mrb[6].mxu1 %vm20_vm2, %v2915_v7  ;;  %3773 = vmatpush3.bf16.msra.mxu0 %v3772_v6  ;;  %v2984_v6 = vld [vmem:[%s4847_s1 + $0x278] sm:$0xf]  ;;  %v2971_v7 = vld [vmem:[%s4848_s0 + $0x70] sm:$0xff] }
  0x31   :  { %3779 = vmatpush3.bf16.msra.mxu1 %v3778_v9  ;;  %3774 = vmatprep.subr.bf16.mxu0 %v3925_v0  ;;  %v3820_v9 = vpack.c.bf16 %v2989_v2, %v2988_v1  ;;  %v3859_v1 = vpack.c.bf16 %v3039_v61, %v3038_v60  ;;  %v3102_v60 = vld [vmem:[%s4847_s1 + $0x4c0] sm:$0xff]  ;;  %v3103_v61 = vld [vmem:[%s4847_s1 + $0x4c8] sm:$0xff] }
  0x32   :  { %3780 = vmatprep.subr.bf16.mxu1 %v3925_v0  ;;  %3421 = vmatprep.mubr.msk.f32.mxu0 %vm3926_vm0, %v3927_v8 }
  0x33   :  { %3434 = vmatprep.mubr.msk.f32.mxu1 %vm3926_vm0, %v3927_v8 }
  0x34   :  { %3776 = vmatpush3.bf16.msra.mxu0 %v3775_v14  ;;  %v2998_v14 = vld [vmem:[%s4847_s1 + $0x2b8] sm:$0xff] }
  0x35   :  { %3782 = vmatpush3.bf16.msra.mxu1 %v3781_v15  ;;  %3419 = vmatprep.subr.mxu0 %v3927_v8  ;;  %v2999_v15 = vld [vmem:[%s4847_s1 + $0x2c0] sm:$0xff] }
  0x36   :  { %3432 = vmatprep.subr.mxu1 %v3927_v8  ;;  %v3829_v17 = vpack.c.bf16 %v2999_v15, %v2998_v14  ;;  %v3054_v14 = vld [vmem:[%s4847_s1 + $0x3d0] sm:$0xff]  ;;  %v3055_v15 = vld [vmem:[%s4847_s1 + $0x3d8] sm:$0xff] }
  0x38   :  { %3420 = vmatpush3.msk.msra.mxu0 %vm24_vm1, %v2928_v18  ;;  %v3004_v18 = vld [vmem:[%s4847_s1 + $0x2d0] sm:$0xff] }
  0x39   :  { %3433 = vmatpush3.msk.msra.mxu1 %vm24_vm1, %v2936_v21  ;;  %3422 = vmatmul.mubr.msk.f32.vlgmr.msra.gmra.mrb[8].mxu0 %vm20_vm2, %v2923_v22  ;;  %v3012_v21 = vld [vmem:[%s4847_s1 + $0x2f8] sm:$0xff]  ;;  %v3013_v22 = vld [vmem:[%s4847_s1 + $0x300] sm:$0xff]  ;;  %v3832_v26 = vpack.c.bf16 %v3005_v19, %v3004_v18  ;;  %v3871_v18 = vpack.c.bf16 %v3055_v15, %v3054_v14 }
  0x3a   :  { %3435 = vmatmul.mubr.msk.f32.vlgmr.msra.gmra.mrb[8].mxu1 %vm20_vm2, %v2931_v23  ;;  %3783 = vmatprep.subr.bf16.mxu0 %v3925_v0  ;;  %v3000_v23 = vld [vmem:[%s4847_s1 + $0x2c8] sm:$0xf]  ;;  %v3838_v27 = vpack.c.bf16 %v3013_v22, %v3012_v21  ;;  %v3069_v21 = vld [vmem:[%s4847_s1 + $0x418] sm:$0xff]  ;;  %v3056_v22 = vld [vmem:[%s4847_s1 + $0x3e0] sm:$0xf] }
  0x3b   :  { %3789 = vmatprep.subr.bf16.mxu1 %v3925_v0  ;;  %3785 = vmatpush3.bf16.msra.mxu0 %v3784_v24  ;;  %v2987_v24 = vld [vmem:[%s4848_s0 + $0x80] sm:$0xff] }
  0x3c   :  { %3791 = vmatpush3.bf16.msra.mxu1 %v3790_v25  ;;  %3786 = vmatprep.subr.bf16.mxu0 %v3925_v0  ;;  %v2995_v25 = vld [vmem:[%s4848_s0 + $0x88] sm:$0xff] }
  0x3d   :  { %3792 = vmatprep.subr.bf16.mxu1 %v3925_v0  ;;  %3447 = vmatprep.mubr.msk.f32.mxu0 %vm3926_vm0, %v3927_v8 }
  0x3e   :  { %3460 = vmatprep.mubr.msk.f32.mxu1 %vm3926_vm0, %v3927_v8 }
  0x3f   :  { %3788 = vmatpush3.bf16.msra.mxu0 %v3787_v30  ;;  %v3014_v30 = vld [vmem:[%s4847_s1 + $0x308] sm:$0xff] }
  0x40   :  { %3794 = vmatpush3.bf16.msra.mxu1 %v3793_v31  ;;  %3445 = vmatprep.subr.mxu0 %v3927_v8  ;;  %v3015_v31 = vld [vmem:[%s4847_s1 + $0x310] sm:$0xff] }
  0x41   :  { %3458 = vmatprep.subr.mxu1 %v3927_v8  ;;  %v3841_v33 = vpack.c.bf16 %v3015_v31, %v3014_v30  ;;  %v3070_v30 = vld [vmem:[%s4847_s1 + $0x420] sm:$0xff]  ;;  %v3071_v31 = vld [vmem:[%s4847_s1 + $0x428] sm:$0xff] }
  0x43   :  { %3446 = vmatpush3.msk.msra.mxu0 %vm24_vm1, %v2944_v34  ;;  %v3020_v34 = vld [vmem:[%s4847_s1 + $0x320] sm:$0xff] }
  0x44   :  { %3459 = vmatpush3.msk.msra.mxu1 %vm24_vm1, %v2952_v37  ;;  %3448 = vmatmul.mubr.msk.f32.vlgmr.msra.gmra.mrb[10].mxu0 %vm20_vm2, %v2939_v38  ;;  %v3028_v37 = vld [vmem:[%s4847_s1 + $0x348] sm:$0xff]  ;;  %v3029_v38 = vld [vmem:[%s4847_s1 + $0x350] sm:$0xff] }
  0x45   :  { %3795 = vmatprep.subr.bf16.mxu0 %v3925_v0  ;;  %3801 = vmatprep.subr.bf16.mxu1 %v3925_v0  ;;  %v3850_v43 = vpack.c.bf16 %v3029_v38, %v3028_v37  ;;  %v3085_v37 = vld [vmem:[%s4847_s1 + $0x468] sm:$0xff]  ;;  %v3072_v38 = vld [vmem:[%s4847_s1 + $0x430] sm:$0xf] }
  0x46   :  { %3461 = vmatmul.mubr.msk.f32.vlgmr.msra.gmra.mrb[10].mxu1 %vm20_vm2, %v2947_v40  ;;  %3797 = vmatpush3.bf16.msra.mxu0 %v3796_v39  ;;  %v3016_v39 = vld [vmem:[%s4847_s1 + $0x318] sm:$0xf]  ;;  %v3003_v40 = vld [vmem:[%s4848_s0 + $0x90] sm:$0xff] }
  0x47   :  { %3803 = vmatpush3.bf16.msra.mxu1 %v3802_v41  ;;  %3798 = vmatprep.subr.bf16.mxu0 %v3925_v0  ;;  %v3844_v41 = vpack.c.bf16 %v3021_v35, %v3020_v34  ;;  %v3883_v34 = vpack.c.bf16 %v3071_v31, %v3070_v30 }
  0x48   :  { %3804 = vmatprep.subr.bf16.mxu1 %v3925_v0  ;;  %3473 = vmatprep.mubr.msk.f32.mxu0 %vm3926_vm0, %v3927_v8 }
  0x49   :  { %3486 = vmatprep.mubr.msk.f32.mxu1 %vm3926_vm0, %v3927_v8 }
  0x4a   :  { %3800 = vmatpush3.bf16.msra.mxu0 %v3799_v46  ;;  %v3030_v46 = vld [vmem:[%s4847_s1 + $0x358] sm:$0xff] }
  0x4b   :  { %3806 = vmatpush3.bf16.msra.mxu1 %v3805_v47  ;;  %3471 = vmatprep.subr.mxu0 %v3927_v8  ;;  %v3031_v47 = vld [vmem:[%s4847_s1 + $0x360] sm:$0xff] }
  0x4c   :  { %3484 = vmatprep.subr.mxu1 %v3927_v8  ;;  %v3853_v49 = vpack.c.bf16 %v3031_v47, %v3030_v46  ;;  %v3075_v46 = vld [vmem:[%s4848_s0 + $0xd8] sm:$0xff] }
  0x4e   :  { %3472 = vmatpush3.msk.msra.mxu0 %vm24_vm1, %v2960_v50  ;;  %v3036_v50 = vld [vmem:[%s4847_s1 + $0x370] sm:$0xff] }
  0x4f   :  { %3485 = vmatpush3.msk.msra.mxu1 %vm24_vm1, %v2968_v53  ;;  %3474 = vmatmul.mubr.msk.f32.vlgmr.msra.gmra.mrb[12].mxu0 %vm20_vm2, %v2955_v54  ;;  %v3044_v53 = vld [vmem:[%s4847_s1 + $0x398] sm:$0xff]  ;;  %v3045_v54 = vld [vmem:[%s4847_s1 + $0x3a0] sm:$0xff] }
  0x50   :  { %3807 = vmatprep.subr.bf16.mxu0 %v3925_v0  ;;  %3813 = vmatprep.subr.bf16.mxu1 %v3925_v0  ;;  %v3862_v59 = vpack.c.bf16 %v3045_v54, %v3044_v53  ;;  %v3101_v53 = vld [vmem:[%s4847_s1 + $0x4b8] sm:$0xff]  ;;  %v3088_v54 = vld [vmem:[%s4847_s1 + $0x480] sm:$0xf] }
  0x51   :  { %3487 = vmatmul.mubr.msk.f32.vlgmr.msra.gmra.mrb[12].mxu1 %vm20_vm2, %v2963_v56  ;;  %3809 = vmatpush3.bf16.msra.mxu0 %v3808_v55  ;;  %v3032_v55 = vld [vmem:[%s4847_s1 + $0x368] sm:$0xf]  ;;  %v3019_v56 = vld [vmem:[%s4848_s0 + $0xa0] sm:$0xff] }
  0x52   :  { %3815 = vmatpush3.bf16.msra.mxu1 %v3814_v57  ;;  %3810 = vmatprep.subr.bf16.mxu0 %v3925_v0  ;;  %v3856_v57 = vpack.c.bf16 %v3037_v51, %v3036_v50  ;;  %v3895_v50 = vpack.c.bf16 %v3087_v45, %v3086_v44 }
  0x53   :  { %3816 = vmatprep.subr.bf16.mxu1 %v3925_v0  ;;  %3499 = vmatprep.mubr.msk.f32.mxu0 %vm3926_vm0, %v3927_v8 }
  0x54   :  { %3512 = vmatprep.mubr.msk.f32.mxu1 %vm3926_vm0, %v3927_v8 }
  0x55   :  { %3812 = vmatpush3.bf16.msra.mxu0 %v3811_v62  ;;  %v3046_v62 = vld [vmem:[%s4847_s1 + $0x3a8] sm:$0xff] }
  0x56   :  { %3818 = vmatpush3.bf16.msra.mxu1 %v3817_v63  ;;  %3497 = vmatprep.subr.mxu0 %v3927_v8  ;;  %v3047_v63 = vld [vmem:[%s4847_s1 + $0x3b0] sm:$0xff] }
  0x57   :  { %3510 = vmatprep.subr.mxu1 %v3927_v8  ;;  %v3865_v2 = vpack.c.bf16 %v3047_v63, %v3046_v62  ;;  %v3091_v62 = vld [vmem:[%s4848_s0 + $0xe8] sm:$0xff] }
  0x59   :  { %3498 = vmatpush3.msk.msra.mxu0 %vm24_vm1, %v2976_v3  ;;  %v3052_v3 = vld [vmem:[%s4847_s1 + $0x3c0] sm:$0xff] }
  0x5a   :  { %3511 = vmatpush3.msk.msra.mxu1 %vm24_vm1, %v2984_v6  ;;  %3500 = vmatmul.mubr.msk.f32.vlgmr.msra.gmra.mrb[14].mxu0 %vm20_vm2, %v2971_v7  ;;  %v3060_v6 = vld [vmem:[%s4847_s1 + $0x3e8] sm:$0xff]  ;;  %v3061_v7 = vld [vmem:[%s4847_s1 + $0x3f0] sm:$0xff] }
  0x5b   :  { %3819 = vmatprep.subr.bf16.mxu0 %v3925_v0  ;;  %3825 = vmatprep.subr.bf16.mxu1 %v3925_v0  ;;  %v3874_v13 = vpack.c.bf16 %v3061_v7, %v3060_v6  ;;  %v3099_v6 = vld [vmem:[%s4848_s0 + $0xf0] sm:$0xff]  ;;  %v3107_v7 = vld [vmem:[%s4848_s0 + $0xf8] sm:$0xff] }
  0x5c   :  { %3513 = vmatmul.mubr.msk.f32.vlgmr.msra.gmra.mrb[14].mxu1 %vm20_vm2, %v2979_v10  ;;  %3821 = vmatpush3.bf16.msra.mxu0 %v3820_v9  ;;  %v3048_v9 = vld [vmem:[%s4847_s1 + $0x3b8] sm:$0xf]  ;;  %v3035_v10 = vld [vmem:[%s4848_s0 + $0xb0] sm:$0xff] }
  0x5d   :  { %3827 = vmatpush3.bf16.msra.mxu1 %v3826_v11  ;;  %3822 = vmatprep.subr.bf16.mxu0 %v3925_v0  ;;  %v3868_v11 = vpack.c.bf16 %v3053_v4, %v3052_v3  ;;  %v3907_v3 = vpack.c.bf16 %v3103_v61, %v3102_v60 }
  0x5e   :  { %3828 = vmatprep.subr.bf16.mxu1 %v3925_v0  ;;  %3525 = vmatprep.mubr.msk.f32.mxu0 %vm3926_vm0, %v3927_v8 }
  0x5f   :  { %3538 = vmatprep.mubr.msk.f32.mxu1 %vm3926_vm0, %v3927_v8 }
  0x60   :  { %3824 = vmatpush3.bf16.msra.mxu0 %v3823_v16  ;;  %v3062_v16 = vld [vmem:[%s4847_s1 + $0x3f8] sm:$0xff] }
  0x61   :  { %3830 = vmatpush3.bf16.msra.mxu1 %v3829_v17  ;;  %3523 = vmatprep.subr.mxu0 %v3927_v8  ;;  %v3063_v17 = vld [vmem:[%s4847_s1 + $0x400] sm:$0xff] }
  0x62   :  { %3536 = vmatprep.subr.mxu1 %v3927_v8  ;;  %v3877_v19 = vpack.c.bf16 %v3063_v17, %v3062_v16 }
  0x64   :  { %3524 = vmatpush3.msk.msra.mxu0 %vm24_vm1, %v2992_v20  ;;  %v3068_v20 = vld [vmem:[%s4847_s1 + $0x410] sm:$0xff] }
  0x65   :  { %3537 = vmatpush3.msk.msra.mxu1 %vm24_vm1, %v3000_v23  ;;  %3526 = vmatmul.mubr.msk.f32.vlgmr.msra.gmra.mrb[16].mxu0 %vm20_vm2, %v2987_v24  ;;  %v3076_v23 = vld [vmem:[%s4847_s1 + $0x438] sm:$0xff]  ;;  %v3077_v24 = vld [vmem:[%s4847_s1 + $0x440] sm:$0xff]  ;;  %v3880_v28 = vpack.c.bf16 %v3069_v21, %v3068_v20 }
  0x66   :  { %3539 = vmatmul.mubr.msk.f32.vlgmr.msra.gmra.mrb[16].mxu1 %vm20_vm2, %v2995_v25  ;;  %3831 = vmatprep.subr.bf16.mxu0 %v3925_v0  ;;  %v3064_v25 = vld [vmem:[%s4847_s1 + $0x408] sm:$0xf]  ;;  %v3886_v29 = vpack.c.bf16 %v3077_v24, %v3076_v23 }
  0x67   :  { %3837 = vmatprep.subr.bf16.mxu1 %v3925_v0  ;;  %3833 = vmatpush3.bf16.msra.mxu0 %v3832_v26  ;;  %v3051_v26 = vld [vmem:[%s4848_s0 + $0xc0] sm:$0xff] }
  0x68   :  { %3839 = vmatpush3.bf16.msra.mxu1 %v3838_v27  ;;  %3834 = vmatprep.subr.bf16.mxu0 %v3925_v0  ;;  %v3059_v27 = vld [vmem:[%s4848_s0 + $0xc8] sm:$0xff] }
  0x69   :  { %3840 = vmatprep.subr.bf16.mxu1 %v3925_v0  ;;  %3551 = vmatprep.mubr.msk.f32.mxu0 %vm3926_vm0, %v3927_v8 }
  0x6a   :  { %3564 = vmatprep.mubr.msk.f32.mxu1 %vm3926_vm0, %v3927_v8 }
  0x6b   :  { %3836 = vmatpush3.bf16.msra.mxu0 %v3835_v32  ;;  %v3078_v32 = vld [vmem:[%s4847_s1 + $0x448] sm:$0xff] }
  0x6c   :  { %3842 = vmatpush3.bf16.msra.mxu1 %v3841_v33  ;;  %3549 = vmatprep.subr.mxu0 %v3927_v8  ;;  %v3079_v33 = vld [vmem:[%s4847_s1 + $0x450] sm:$0xff] }
  0x6d   :  { %3562 = vmatprep.subr.mxu1 %v3927_v8  ;;  %v3889_v35 = vpack.c.bf16 %v3079_v33, %v3078_v32 }
  0x6f   :  { %3550 = vmatpush3.msk.msra.mxu0 %vm24_vm1, %v3008_v36  ;;  %v3084_v36 = vld [vmem:[%s4847_s1 + $0x460] sm:$0xff] }
  0x70   :  { %3563 = vmatpush3.msk.msra.mxu1 %vm24_vm1, %v3016_v39  ;;  %3552 = vmatmul.mubr.msk.f32.vlgmr.msra.gmra.mrb[18].mxu0 %vm20_vm2, %v3003_v40  ;;  %v3092_v39 = vld [vmem:[%s4847_s1 + $0x488] sm:$0xff]  ;;  %v3093_v40 = vld [vmem:[%s4847_s1 + $0x490] sm:$0xff] }
  0x71   :  { %3843 = vmatprep.subr.bf16.mxu0 %v3925_v0  ;;  %3849 = vmatprep.subr.bf16.mxu1 %v3925_v0  ;;  %v3898_v47 = vpack.c.bf16 %v3093_v40, %v3092_v39 }
  0x72   :  { %3565 = vmatmul.mubr.msk.f32.vlgmr.msra.gmra.mrb[18].mxu1 %vm20_vm2, %v3011_v42  ;;  %3845 = vmatpush3.bf16.msra.mxu0 %v3844_v41  ;;  %v3067_v41 = vld [vmem:[%s4848_s0 + $0xd0] sm:$0xff]  ;;  %v3892_v42 = vpack.c.bf16 %v3085_v37, %v3084_v36 }
  0x73   :  { %3851 = vmatpush3.bf16.msra.mxu1 %v3850_v43  ;;  %3846 = vmatprep.subr.bf16.mxu0 %v3925_v0  ;;  %v3080_v43 = vld [vmem:[%s4847_s1 + $0x458] sm:$0xf] }
  0x74   :  { %3852 = vmatprep.subr.bf16.mxu1 %v3925_v0  ;;  %3577 = vmatprep.mubr.msk.f32.mxu0 %vm3926_vm0, %v3927_v8 }
  0x75   :  { %3590 = vmatprep.mubr.msk.f32.mxu1 %vm3926_vm0, %v3927_v8 }
  0x76   :  { %3848 = vmatpush3.bf16.msra.mxu0 %v3847_v48  ;;  %v3094_v48 = vld [vmem:[%s4847_s1 + $0x498] sm:$0xff] }
  0x77   :  { %3854 = vmatpush3.bf16.msra.mxu1 %v3853_v49  ;;  %3575 = vmatprep.subr.mxu0 %v3927_v8  ;;  %v3095_v49 = vld [vmem:[%s4847_s1 + $0x4a0] sm:$0xff] }
  0x78   :  { %3588 = vmatprep.subr.mxu1 %v3927_v8  ;;  %v3901_v51 = vpack.c.bf16 %v3095_v49, %v3094_v48 }
  0x7a   :  { %3576 = vmatpush3.msk.msra.mxu0 %vm24_vm1, %v3024_v52  ;;  %v3100_v52 = vld [vmem:[%s4847_s1 + $0x4b0] sm:$0xff] }
  0x7b   :  { %3589 = vmatpush3.msk.msra.mxu1 %vm24_vm1, %v3032_v55  ;;  %3578 = vmatmul.mubr.msk.f32.vlgmr.msra.gmra.mrb[20].mxu0 %vm20_vm2, %v3019_v56  ;;  %v3108_v55 = vld [vmem:[%s4847_s1 + $0x4d8] sm:$0xff]  ;;  %v3109_v56 = vld [vmem:[%s4847_s1 + $0x4e0] sm:$0xff] }
  0x7c   :  { %3855 = vmatprep.subr.bf16.mxu0 %v3925_v0  ;;  %3861 = vmatprep.subr.bf16.mxu1 %v3925_v0  ;;  %v3910_v63 = vpack.c.bf16 %v3109_v56, %v3108_v55 }
  0x7d   :  { %3591 = vmatmul.mubr.msk.f32.vlgmr.msra.gmra.mrb[20].mxu1 %vm20_vm2, %v3027_v58  ;;  %3857 = vmatpush3.bf16.msra.mxu0 %v3856_v57  ;;  %v3083_v57 = vld [vmem:[%s4848_s0 + $0xe0] sm:$0xff]  ;;  %v3904_v58 = vpack.c.bf16 %v3101_v53, %v3100_v52  ;;  %s3930_s0 = smov 48  }
  0x7e   :  { %3863 = vmatpush3.bf16.msra.mxu1 %v3862_v59  ;;  %3858 = vmatprep.subr.bf16.mxu0 %v3925_v0  ;;  %v3096_v59 = vld [vmem:[%s4847_s1 + $0x4a8] sm:$0xf] }
  0x7f   :  { %3864 = vmatprep.subr.bf16.mxu1 %v3925_v0  ;;  %3603 = vmatprep.mubr.msk.f32.mxu0 %vm3926_vm0, %v3927_v8 }
  0x80   :  { %3616 = vmatprep.mubr.msk.f32.mxu1 %vm3926_vm0, %v3927_v8 }
  0x81   :  { %3860 = vmatpush3.bf16.msra.mxu0 %v3859_v1  ;;  %v3110_v1 = vld [vmem:[%s4847_s1 + $0x4e8] sm:$0xff] }
  0x82   :  { %3866 = vmatpush3.bf16.msra.mxu1 %v3865_v2  ;;  %3601 = vmatprep.subr.mxu0 %v3927_v8  ;;  %v3111_v2 = vld [vmem:[%s4847_s1 + $0x4f0] sm:$0xff] }
  0x83   :  { %3614 = vmatprep.subr.mxu1 %v3927_v8  ;;  %v3913_v4 = vpack.c.bf16 %v3111_v2, %v3110_v1 }
  0x85   :  { %3602 = vmatpush3.msk.msra.mxu0 %vm24_vm1, %v3040_v5  ;;  %v3104_v5 = vld [vmem:[%s4847_s1 + $0x4d0] sm:$0xf] }
  0x86   :  { %3615 = vmatpush3.msk.msra.mxu1 %vm24_vm1, %v3048_v9  ;;  %3604 = vmatmul.mubr.msk.f32.vlgmr.msra.gmra.mrb[22].mxu0 %vm20_vm2, %v3035_v10 }
  0x87   :  { %3867 = vmatprep.subr.bf16.mxu0 %v3925_v0  ;;  %3873 = vmatprep.subr.bf16.mxu1 %v3925_v0 }
  0x88   :  { %3617 = vmatmul.mubr.msk.f32.vlgmr.msra.gmra.mrb[22].mxu1 %vm20_vm2, %v3043_v12  ;;  %3869 = vmatpush3.bf16.msra.mxu0 %v3868_v11 }
  0x89   :  { %3875 = vmatpush3.bf16.msra.mxu1 %v3874_v13  ;;  %3870 = vmatprep.subr.bf16.mxu0 %v3925_v0 }
  0x8a   :  { %3876 = vmatprep.subr.bf16.mxu1 %v3925_v0  ;;  %3629 = vmatprep.mubr.msk.f32.mxu0 %vm3926_vm0, %v3927_v8 }
  0x8b   :  { %3642 = vmatprep.mubr.msk.f32.mxu1 %vm3926_vm0, %v3927_v8 }
  0x8c   :  { %3872 = vmatpush3.bf16.msra.mxu0 %v3871_v18 }
  0x8d   :  { %3878 = vmatpush3.bf16.msra.mxu1 %v3877_v19  ;;  %3627 = vmatprep.subr.mxu0 %v3927_v8 }
  0x8e   :  { %3640 = vmatprep.subr.mxu1 %v3927_v8 }
  0x90   :  { %3628 = vmatpush3.msk.msra.mxu0 %vm24_vm1, %v3056_v22 }
  0x91   :  { %3641 = vmatpush3.msk.msra.mxu1 %vm24_vm1, %v3064_v25  ;;  %3630 = vmatmul.mubr.msk.f32.vlgmr.msra.gmra.mrb[24].mxu0 %vm20_vm2, %v3051_v26 }
  0x92   :  { %3643 = vmatmul.mubr.msk.f32.vlgmr.msra.gmra.mrb[24].mxu1 %vm20_vm2, %v3059_v27  ;;  %3879 = vmatprep.subr.bf16.mxu0 %v3925_v0 }
  0x93   :  { %3881 = vmatpush3.bf16.msra.mxu0 %v3880_v28  ;;  %3885 = vmatprep.subr.bf16.mxu1 %v3925_v0 }
  0x94   :  { %3882 = vmatprep.subr.bf16.mxu0 %v3925_v0  ;;  %3887 = vmatpush3.bf16.msra.mxu1 %v3886_v29 }
  0x95   :  { %3888 = vmatprep.subr.bf16.mxu1 %v3925_v0  ;;  %3655 = vmatprep.mubr.msk.f32.mxu0 %vm3926_vm0, %v3927_v8 }
  0x96   :  { %3668 = vmatprep.mubr.msk.f32.mxu1 %vm3926_vm0, %v3927_v8 }
  0x97   :  { %3884 = vmatpush3.bf16.msra.mxu0 %v3883_v34 }
  0x98   :  { %3653 = vmatprep.subr.mxu0 %v3927_v8  ;;  %3890 = vmatpush3.bf16.msra.mxu1 %v3889_v35 }
  0x99   :  { %3666 = vmatprep.subr.mxu1 %v3927_v8 }
  0x9b   :  { %3654 = vmatpush3.msk.msra.mxu0 %vm24_vm1, %v3072_v38 }
  0x9c   :  { %3656 = vmatmul.mubr.msk.f32.vlgmr.msra.gmra.mrb[26].mxu0 %vm20_vm2, %v3067_v41  ;;  %3891 = vmatprep.subr.bf16.mxu0 %v3925_v0 }
  0x9d   :  { %3893 = vmatpush3.bf16.msra.mxu0 %v3892_v42  ;;  %3667 = vmatpush3.msk.msra.mxu1 %vm24_vm1, %v3080_v43 }
  0x9e   :  { %3897 = vmatprep.subr.bf16.mxu1 %v3925_v0  ;;  %3669 = vmatmul.mubr.msk.f32.vlgmr.msra.gmra.mrb[26].mxu1 %vm20_vm2, %v3075_v46 }
  0x9f   :  { %3894 = vmatprep.subr.bf16.mxu0 %v3925_v0  ;;  %3899 = vmatpush3.bf16.msra.mxu1 %v3898_v47 }
  0xa0   :  { %3900 = vmatprep.subr.bf16.mxu1 %v3925_v0  ;;  %3681 = vmatprep.mubr.msk.f32.mxu0 %vm3926_vm0, %v3927_v8 }
  0xa1   :  { %3896 = vmatpush3.bf16.msra.mxu0 %v3895_v50  ;;  %3694 = vmatprep.mubr.msk.f32.mxu1 %vm3926_vm0, %v3927_v8 }
  0xa2   :  { %3679 = vmatprep.subr.mxu0 %v3927_v8 }
  0xa3   :  { %3902 = vmatpush3.bf16.msra.mxu1 %v3901_v51 }
  0xa4   :  { %3692 = vmatprep.subr.mxu1 %v3927_v8 }
  0xa5   :  { %3680 = vmatpush3.msk.msra.mxu0 %vm24_vm1, %v3088_v54 }
  0xa6   :  { %3682 = vmatmul.mubr.msk.f32.vlgmr.msra.gmra.mrb[28].mxu0 %vm20_vm2, %v3083_v57  ;;  %3903 = vmatprep.subr.bf16.mxu0 %v3925_v0 }
  0xa7   :  { %3905 = vmatpush3.bf16.msra.mxu0 %v3904_v58  ;;  %3693 = vmatpush3.msk.msra.mxu1 %vm24_vm1, %v3096_v59 }
  0xa8   :  { %3909 = vmatprep.subr.bf16.mxu1 %v3925_v0  ;;  %3695 = vmatmul.mubr.msk.f32.vlgmr.msra.gmra.mrb[28].mxu1 %vm20_vm2, %v3091_v62 }
  0xa9   :  { %3906 = vmatprep.subr.bf16.mxu0 %v3925_v0  ;;  %3911 = vmatpush3.bf16.msra.mxu1 %v3910_v63 }
  0xaa   :  { %3912 = vmatprep.subr.bf16.mxu1 %v3925_v0  ;;  %3707 = vmatprep.mubr.msk.f32.mxu0 %vm3926_vm0, %v3927_v8  ;;  %v3112_v0 = vld [vmem:[%s4847_s1 + $0x4f8] sm:$0xf]  ;;  %s3929_s1 = smov 32  }
  0xab   :  { %3908 = vmatpush3.bf16.msra.mxu0 %v3907_v3  ;;  %3720 = vmatprep.mubr.msk.f32.mxu1 %vm3926_vm0, %v3927_v8 }
  0xac   :  { %3705 = vmatprep.subr.mxu0 %v3927_v8 }
  0xad   :  { %3914 = vmatpush3.bf16.msra.mxu1 %v3913_v4 }
  0xae   :  { %3718 = vmatprep.subr.mxu1 %v3927_v8 }
  0xaf   :  { %3706 = vmatpush3.msk.msra.mxu0 %vm24_vm1, %v3104_v5 }
  0xb0   :  { %3708 = vmatmul.mubr.msk.f32.vlgmr.msra.gmra.mrb[30].mxu0 %vm20_vm2, %v3099_v6 }
  0xb1   :  { %3719 = vmatpush3.msk.msra.mxu1 %vm24_vm1, %v3112_v0 }
  0xb2   :  { %3721 = vmatmul.mubr.msk.f32.vlgmr.msra.gmra.mrb[30].mxu1 %vm20_vm2, %v3107_v7 }
  0xe0   :  { %v4755_v9 = vpop.f32.mrb[0].mxu0 }
  0xe1   :  { %v178_v10 = vpop.f32.mrb[0].mxu1  ;;  %v3319_v8 = vpop.f32.mrb[1].mxu0 }
  0xe2   :  { %687 = vrot.lane.b32.xlu0 %v178_v10, %s3928_s18  ;;  %v3332_v11 = vpop.f32.mrb[1].mxu1 }
  0xeb   :  { %v262_v12 = vpop.f32.mrb[2].mxu0 }
  0xec   :  { %691 = vrot.lane.b32.xlu0 %v262_v12, %s3929_s1  ;;  %v3345_v13 = vpop.f32.mrb[3].mxu0  ;;  %v728_v12 = vld [vmem:[%s4849_s2] sm:$0xff] }
  0xed   :  { %v346_v14 = vpop.f32.mrb[2].mxu1 }
  0xee   :  { %v3358_v15 = vpop.f32.mrb[3].mxu1 }
  0xf0   :  { %695 = vrot.lane.b32.xlu0 %v346_v14, %s3930_s0 }
  0xf6   :  { %v430_v16 = vpop.f32.mrb[4].mxu0 }
  0xf7   :  { %699 = vrot.lane.b32.xlu0 %v430_v16, %s3931_s19  ;;  %v3371_v17 = vpop.f32.mrb[5].mxu0 }
  0xf8   :  { %v514_v18 = vpop.f32.mrb[4].mxu1 }
  0xf9   :  { %v3384_v19 = vpop.f32.mrb[5].mxu1 }
  0xfb   :  { %703 = vrot.lane.b32.xlu0 %v514_v18, %s3932_s20 }
 0x101   :  { %v598_v20 = vpop.f32.mrb[6].mxu0 }
 0x102   :  { %707 = vrot.lane.b32.xlu0 %v598_v20, %s3933_s21  ;;  %v3397_v21 = vpop.f32.mrb[7].mxu0 }
 0x103   :  { %v682_v22 = vpop.f32.mrb[6].mxu1 }
 0x104   :  { %v3410_v23 = vpop.f32.mrb[7].mxu1 }
 0x106   :  { %711 = vrot.lane.b32.xlu0 %v682_v22, %s3934_s22 }
 0x10c   :  { %v4764_v24 = vpop.f32.mrb[8].mxu0 }
 0x10d   :  { %v895_v25 = vpop.f32.mrb[8].mxu1  ;;  %v3423_v26 = vpop.f32.mrb[9].mxu0 }
 0x10e   :  { %1404 = vrot.lane.b32.xlu0 %v895_v25, %s3928_s18  ;;  %v3436_v27 = vpop.f32.mrb[9].mxu1 }
 0x117   :  { %v979_v28 = vpop.f32.mrb[10].mxu0 }
 0x118   :  { %1408 = vrot.lane.b32.xlu1 %v979_v28, %s3929_s1  ;;  %v3449_v29 = vpop.f32.mrb[11].mxu0 }
 0x119   :  { %v1063_v30 = vpop.f32.mrb[10].mxu1 }
 0x11a   :  { %v3462_v31 = vpop.f32.mrb[11].mxu1 }
 0x11c   :  { %1412 = vrot.lane.b32.xlu1 %v1063_v30, %s3930_s0 }
 0x122   :  { %v1147_v32 = vpop.f32.mrb[12].mxu0 }
 0x123   :  { %1416 = vrot.lane.b32.xlu1 %v1147_v32, %s3931_s19  ;;  %v3475_v33 = vpop.f32.mrb[13].mxu0 }
 0x124   :  { %v1231_v34 = vpop.f32.mrb[12].mxu1 }
 0x125   :  { %v3488_v35 = vpop.f32.mrb[13].mxu1 }
 0x127   :  { %1420 = vrot.lane.b32.xlu1 %v1231_v34, %s3932_s20 }
 0x12d   :  { %v1315_v36 = vpop.f32.mrb[14].mxu0 }
 0x12e   :  { %1424 = vrot.lane.b32.xlu1 %v1315_v36, %s3933_s21  ;;  %v3501_v37 = vpop.f32.mrb[15].mxu0  ;;  %v1438_v36 = vld [vmem:[%s4849_s2 + $0x8] sm:$0xff] }
 0x12f   :  { %v1399_v38 = vpop.f32.mrb[14].mxu1 }
 0x130   :  { %v3514_v39 = vpop.f32.mrb[15].mxu1 }
 0x132   :  { %1428 = vrot.lane.b32.xlu1 %v1399_v38, %s3934_s22 }
 0x138   :  { %v4773_v40 = vpop.f32.mrb[16].mxu0 }
 0x139   :  { %v1605_v41 = vpop.f32.mrb[16].mxu1  ;;  %v3527_v42 = vpop.f32.mrb[17].mxu0 }
 0x13a   :  { %2114 = vrot.lane.b32.xlu1 %v1605_v41, %s3928_s18  ;;  %v3540_v43 = vpop.f32.mrb[17].mxu1 }
 0x143   :  { %v1689_v44 = vpop.f32.mrb[18].mxu0 }
 0x144   :  { %2118 = vrot.lane.b32.xlu0 %v1689_v44, %s3929_s1  ;;  %v3553_v45 = vpop.f32.mrb[19].mxu0 }
 0x145   :  { %v1773_v46 = vpop.f32.mrb[18].mxu1 }
 0x146   :  { %v3566_v47 = vpop.f32.mrb[19].mxu1 }
 0x148   :  { %2122 = vrot.lane.b32.xlu0 %v1773_v46, %s3930_s0 }
 0x14e   :  { %v1857_v48 = vpop.f32.mrb[20].mxu0 }
 0x14f   :  { %2126 = vrot.lane.b32.xlu0 %v1857_v48, %s3931_s19  ;;  %v3579_v49 = vpop.f32.mrb[21].mxu0 }
 0x150   :  { %v1941_v50 = vpop.f32.mrb[20].mxu1 }
 0x151   :  { %v3592_v51 = vpop.f32.mrb[21].mxu1 }
 0x153   :  { %2130 = vrot.lane.b32.xlu0 %v1941_v50, %s3932_s20 }
 0x154   :  { %v688_v55 = vpop.permute.xlu0 %687 }
 0x155   :  { %v715_v6 = vsel %vm714_vm3, %v4755_v9, %v688_v55 }
 0x159   :  { %v2025_v52 = vpop.f32.mrb[22].mxu0 }
 0x15a   :  { %2134 = vrot.lane.b32.xlu0 %v2025_v52, %s3933_s21  ;;  %v3605_v53 = vpop.f32.mrb[23].mxu0  ;;  %v2148_v52 = vld [vmem:[%s4849_s2 + $0x10] sm:$0xff] }
 0x15b   :  { %v2109_v54 = vpop.f32.mrb[22].mxu1 }
 0x15c   :  { %v3618_v56 = vpop.f32.mrb[23].mxu1 }
 0x15e   :  { %2138 = vrot.lane.b32.xlu0 %v2109_v54, %s3934_s22  ;;  %v692_v57 = vpop.permute.xlu0 %691 }
 0x15f   :  { %v717_v0 = vsel %vm716_vm4, %v715_v6, %v692_v57 }
 0x162   :  { %v696_v62 = vpop.permute.xlu0 %695 }
 0x163   :  { %v719_v10 = vsel %vm718_vm5, %v717_v0, %v696_v62 }
 0x164   :  { %v4782_v58 = vpop.f32.mrb[24].mxu0 }
 0x165   :  { %v2315_v59 = vpop.f32.mrb[24].mxu1  ;;  %v3631_v60 = vpop.f32.mrb[25].mxu0 }
 0x166   :  { %2824 = vrot.lane.b32.xlu1 %v2315_v59, %s3928_s18  ;;  %v3644_v61 = vpop.f32.mrb[25].mxu1 }
 0x169   :  { %v700_v63 = vpop.permute.xlu0 %699 }
 0x16a   :  { %v721_v8 = vsel %vm720_vm6, %v719_v10, %v700_v63 }
 0x16d   :  { %v704_v3 = vpop.permute.xlu0 %703 }
 0x16e   :  { %v723_v11 = vsel %vm722_vm7, %v721_v8, %v704_v3 }
 0x16f   :  { %v2399_v1 = vpop.f32.mrb[26].mxu0 }
 0x170   :  { %2828 = vrot.lane.b32.xlu1 %v2399_v1, %s3929_s1  ;;  %v3657_v2 = vpop.f32.mrb[27].mxu0 }
 0x171   :  { %v2483_v4 = vpop.f32.mrb[26].mxu1 }
 0x172   :  { %v3670_v5 = vpop.f32.mrb[27].mxu1 }
 0x173   :  { %v2858_v5 = vld [vmem:[%s4849_s2 + $0x18] sm:$0xff] }
 0x174   :  { %2832 = vrot.lane.b32.xlu1 %v2483_v4, %s3930_s0  ;;  %v708_v7 = vpop.permute.xlu0 %707 }
 0x175   :  { %v725_v9 = vsel %vm724_vm8, %v723_v11, %v708_v7 }
 0x178   :  { %v712_v13 = vpop.permute.xlu0 %711 }
 0x179   :  { %v2567_v14 = vpop.f32.mrb[28].mxu0  ;;  %v727_v15 = vsel %vm726_vm9, %v725_v9, %v712_v13 }
 0x17a   :  { %2836 = vrot.lane.b32.xlu1 %v2567_v14, %s3931_s19  ;;  %v3683_v16 = vpop.f32.mrb[29].mxu0  ;;  %v729_v17 = vadd.f32 %v728_v12, %v727_v15 }
 0x17b   :  { %v2651_v18 = vpop.f32.mrb[28].mxu1 }
 0x17c   :  { %v3696_v19 = vpop.f32.mrb[29].mxu1  ;;  %730 = vst [vmem:[%s4850_s3] sm:$0xff] %v729_v17 }
 0x17e   :  { %2840 = vrot.lane.b32.xlu1 %v2651_v18, %s3932_s20 }
 0x180   :  { %v1405_v28 = vpop.permute.xlu0 %1404 }
 0x181   :  { %v1431_v30 = vsel %vm714_vm3, %v4764_v24, %v1405_v28 }
 0x183   :  { %v2735_v20 = vpop.f32.mrb[30].mxu0 }
 0x184   :  { %2844 = vrot.lane.b32.xlu1 %v2735_v20, %s3933_s21  ;;  %v3709_v21 = vpop.f32.mrb[31].mxu0 }
 0x185   :  { %v2819_v22 = vpop.f32.mrb[30].mxu1 }
 0x186   :  { %v3722_v23 = vpop.f32.mrb[31].mxu1 }
 0x188   :  { %2848 = vrot.lane.b32.xlu1 %v2819_v22, %s3934_s22 }
 0x18a   :  { %v1409_v25 = vpop.permute.xlu1 %1408 }
 0x18b   :  { %v1432_v31 = vsel %vm716_vm4, %v1431_v30, %v1409_v25 }
 0x18e   :  { %v1413_v26 = vpop.permute.xlu1 %1412 }
 0x18f   :  { %v1433_v33 = vsel %vm718_vm5, %v1432_v31, %v1413_v26 }
 0x195   :  { %v1417_v27 = vpop.permute.xlu1 %1416 }
 0x196   :  { %v1434_v34 = vsel %vm720_vm6, %v1433_v33, %v1417_v27 }
 0x199   :  { %v1421_v29 = vpop.permute.xlu1 %1420 }
 0x19a   :  { %v1435_v35 = vsel %vm722_vm7, %v1434_v34, %v1421_v29 }
 0x1a0   :  { %v1425_v32 = vpop.permute.xlu1 %1424 }
 0x1a1   :  { %v1436_v37 = vsel %vm724_vm8, %v1435_v35, %v1425_v32 }
 0x1a4   :  { %v1429_v38 = vpop.permute.xlu1 %1428 }
 0x1a5   :  { %v1437_v39 = vsel %vm726_vm9, %v1436_v37, %v1429_v38 }
 0x1a6   :  { %v1439_v41 = vadd.f32 %v1438_v36, %v1437_v39 }
 0x1a8   :  { %1440 = vst [vmem:[%s4850_s3 + $0x8] sm:$0xff] %v1439_v41 }
 0x1ac   :  { %v2115_v44 = vpop.permute.xlu1 %2114 }
 0x1ad   :  { %v2141_v46 = vsel %vm714_vm3, %v4773_v40, %v2115_v44 }
 0x1b6   :  { %v2119_v24 = vpop.permute.xlu0 %2118 }
 0x1b7   :  { %v2142_v47 = vsel %vm716_vm4, %v2141_v46, %v2119_v24 }
 0x1ba   :  { %v2123_v42 = vpop.permute.xlu0 %2122 }
 0x1bb   :  { %v2143_v49 = vsel %vm718_vm5, %v2142_v47, %v2123_v42 }
 0x1c1   :  { %v2127_v43 = vpop.permute.xlu0 %2126 }
 0x1c2   :  { %v2144_v50 = vsel %vm720_vm6, %v2143_v49, %v2127_v43 }
 0x1c5   :  { %v2131_v45 = vpop.permute.xlu0 %2130 }
 0x1c6   :  { %v2145_v51 = vsel %vm722_vm7, %v2144_v50, %v2131_v45 }
 0x1cc   :  { %v2135_v48 = vpop.permute.xlu0 %2134 }
 0x1cd   :  { %v2146_v53 = vsel %vm724_vm8, %v2145_v51, %v2135_v48 }
 0x1d0   :  { %v2139_v54 = vpop.permute.xlu0 %2138 }
 0x1d1   :  { %v2147_v55 = vsel %vm726_vm9, %v2146_v53, %v2139_v54 }
 0x1d2   :  { %v2149_v56 = vadd.f32 %v2148_v52, %v2147_v55 }
 0x1d4   :  { %2150 = vst [vmem:[%s4850_s3 + $0x10] sm:$0xff] %v2149_v56 }
 0x1d8   :  { %v2825_v40 = vpop.permute.xlu1 %2824 }
 0x1d9   :  { %v2851_v62 = vsel %vm714_vm3, %v4782_v58, %v2825_v40 }
 0x1e2   :  { %v2829_v57 = vpop.permute.xlu1 %2828 }
 0x1e3   :  { %v2852_v63 = vsel %vm716_vm4, %v2851_v62, %v2829_v57 }
 0x1e6   :  { %v2833_v59 = vpop.permute.xlu1 %2832 }
 0x1e7   :  { %v2853_v2 = vsel %vm718_vm5, %v2852_v63, %v2833_v59 }
 0x1ec   :  { %v2837_v60 = vpop.permute.xlu1 %2836 }
 0x1ed   :  { %v2854_v3 = vsel %vm720_vm6, %v2853_v2, %v2837_v60 }
 0x1f0   :  { %v2841_v61 = vpop.permute.xlu1 %2840 }
 0x1f1   :  { %v2855_v4 = vsel %vm722_vm7, %v2854_v3, %v2841_v61 }
 0x1f6   :  { %v2845_v1 = vpop.permute.xlu1 %2844 }
 0x1f7   :  { %v2856_v6 = vsel %vm724_vm8, %v2855_v4, %v2845_v1 }
 0x1fa   :  { %v2849_v0 = vpop.permute.xlu1 %2848 }
 0x1fb   :  { %v2857_v7 = vsel %vm726_vm9, %v2856_v6, %v2849_v0 }
 0x1fc   :  { %v2859_v10 = vadd.f32 %v2858_v5, %v2857_v7 }
 0x1fe   :  { %2860 = vst [vmem:[%s4850_s3 + $0x18] sm:$0xff] %v2859_v10 }

</bundles_post_ra>
